<compile_context>
chip_gen: v7x
topology: tpu7x:2x2x1
jax: 0.10.0
libtpu: 0.0.40
codegen_flags: <defaults>
</compile_context>

<pallas_src>
import math
import functools

import jax
import jax.numpy as jnp
from jax.experimental import pallas as pl
from jax.experimental.pallas import tpu as pltpu


# ----------------------------------------------------------------------------
# Tile selection helper
# ----------------------------------------------------------------------------

def _pick_tile(dim, candidates, align):
    """Largest candidate tile that divides `dim` and is `align`-aligned, else full dim."""
    for t in candidates:
        if t % align == 0 and dim % t == 0:
            return t
    return dim


# ----------------------------------------------------------------------------
# Tiled linear:  y = x @ w + b  (optional fused ReLU)
# ----------------------------------------------------------------------------

def _matmul_kernel(x_ref, w_ref, b_ref, o_ref, acc_ref, *, activation):
    @pl.when(pl.program_id(2) == 0)
    def _():
        acc_ref[...] = jnp.zeros_like(acc_ref)

    acc_ref[...] += jnp.dot(x_ref[...], w_ref[...],
                            preferred_element_type=jnp.float32)

    @pl.when(pl.program_id(2) == pl.num_programs(2) - 1)
    def _():
        y = acc_ref[...] + b_ref[...]
        if activation == "relu":
            y = jnp.maximum(y, 0.0)
        o_ref[...] = y.astype(o_ref.dtype)


def linear(x2d, w, b, activation=None):
    """x2d: [M, K], w: [K, N], b: [N] -> [M, N]."""
    M, K = x2d.shape
    N = w.shape[1]
    # M tiles need 8-alignment (sublane), N/K tiles need 128-alignment (lane)
    # or must cover the full dim.  Sizes are modest so the double-buffered
    # working set stays far below even v7x's 64 MiB VMEM.
    tm = _pick_tile(M, (256, 128, 64, 32, 16, 8), 8)
    tn = _pick_tile(N, (512, 256, 128), 128)
    tk = _pick_tile(K, (512, 256, 128), 128)
    grid = (M // tm, N // tn, K // tk)
    return pl.pallas_call(
        functools.partial(_matmul_kernel, activation=activation),
        out_shape=jax.ShapeDtypeStruct((M, N), jnp.float32),
        grid=grid,
        in_specs=[
            pl.BlockSpec((tm, tk), lambda i, j, k: (i, k)),
            pl.BlockSpec((tk, tn), lambda i, j, k: (k, j)),
            pl.BlockSpec((1, tn), lambda i, j, k: (0, j)),
        ],
        out_specs=pl.BlockSpec((tm, tn), lambda i, j, k: (i, j)),
        scratch_shapes=[pltpu.VMEM((tm, tn), jnp.float32)],
        compiler_params=pltpu.CompilerParams(
            dimension_semantics=("parallel", "parallel", "arbitrary")),
    )(x2d, w, b.reshape(1, N))


# ----------------------------------------------------------------------------
# Fused residual-add + LayerNorm, tiled over rows
# ----------------------------------------------------------------------------

def _add_layernorm_kernel(x_ref, r_ref, g_ref, b_ref, o_ref, *, eps):
    x = x_ref[...] + r_ref[...]
    mean = jnp.mean(x, axis=-1, keepdims=True)
    var = jnp.mean((x - mean) ** 2, axis=-1, keepdims=True)
    y = (x - mean) * jax.lax.rsqrt(var + eps)
    o_ref[...] = (y * g_ref[...] + b_ref[...]).astype(o_ref.dtype)


def add_layernorm(x2d, r2d, gamma, beta, eps=1e-5):
    """LayerNorm(x2d + r2d) over the last axis.  x2d/r2d: [M, D]."""
    M, D = x2d.shape
    tm = _pick_tile(M, (512, 256, 128, 64, 32, 16, 8), 8)
    return pl.pallas_call(
        functools.partial(_add_layernorm_kernel, eps=eps),
        out_shape=jax.ShapeDtypeStruct((M, D), jnp.float32),
        grid=(M // tm,),
        in_specs=[
            pl.BlockSpec((tm, D), lambda i: (i, 0)),
            pl.BlockSpec((tm, D), lambda i: (i, 0)),
            pl.BlockSpec((1, D), lambda i: (0, 0)),
            pl.BlockSpec((1, D), lambda i: (0, 0)),
        ],
        out_specs=pl.BlockSpec((tm, D), lambda i: (i, 0)),
        compiler_params=pltpu.CompilerParams(dimension_semantics=("parallel",)),
    )(x2d, r2d, gamma.reshape(1, D), beta.reshape(1, D))


# ----------------------------------------------------------------------------
# Multi-head attention core: all heads of one batch element per grid step.
# q: [B, Sq, D], kv: [B, Sk, 2D] (K then V), add_mask: [B, Sm, Sk] (Sm in {1, Sq}).
# ----------------------------------------------------------------------------

def _attention_kernel(q_ref, kv_ref, m_ref, o_ref, *, num_heads, scale):
    q = q_ref[0]       # [Sq, D]
    kv = kv_ref[0]     # [Sk, 2D]
    m = m_ref[0]       # [Sm, Sk]  additive mask, broadcasts over query rows
    D = q.shape[-1]
    dh = D // num_heads
    head_outs = []
    for h in range(num_heads):                      # static unrolled loop
        qh = q[:, h * dh:(h + 1) * dh]              # [Sq, dh]
        kh = kv[:, h * dh:(h + 1) * dh]             # [Sk, dh]
        vh = kv[:, D + h * dh:D + (h + 1) * dh]     # [Sk, dh]
        s = jnp.einsum("qd,kd->qk", qh, kh,
                       preferred_element_type=jnp.float32) * scale + m
        s = s - jnp.max(s, axis=-1, keepdims=True)
        p = jnp.exp(s)
        p = p * pl.reciprocal(jnp.sum(p, axis=-1, keepdims=True), approx=True)
        head_outs.append(jnp.dot(p, vh, preferred_element_type=jnp.float32))
    o_ref[0] = jnp.concatenate(head_outs, axis=-1).astype(o_ref.dtype)


def attention(q, kv, add_mask, num_heads):
    B, Sq, D = q.shape
    Sk = kv.shape[1]
    Sm = add_mask.shape[1]
    scale = 1.0 / math.sqrt(D // num_heads)
    return pl.pallas_call(
        functools.partial(_attention_kernel, num_heads=num_heads, scale=scale),
        out_shape=jax.ShapeDtypeStruct((B, Sq, D), jnp.float32),
        grid=(B,),
        in_specs=[
            pl.BlockSpec((1, Sq, D), lambda i: (i, 0, 0)),
            pl.BlockSpec((1, Sk, 2 * D), lambda i: (i, 0, 0)),
            pl.BlockSpec((1, Sm, Sk), lambda i: (i, 0, 0)),
        ],
        out_specs=pl.BlockSpec((1, Sq, D), lambda i: (i, 0, 0)),
        compiler_params=pltpu.CompilerParams(dimension_semantics=("parallel",)),
    )(q, kv, add_mask)


# ----------------------------------------------------------------------------
# Multi-head attention wrappers (fused projections, no JAX-side transposes)
# ----------------------------------------------------------------------------

def mha_self(p, x, add_mask, num_heads):
    B, S, D = x.shape
    w_qkv = jnp.concatenate([p["q"]["w"], p["k"]["w"], p["v"]["w"]], axis=1)   # [D, 3D]
    b_qkv = jnp.concatenate([p["q"]["b"], p["k"]["b"], p["v"]["b"]], axis=0)
    qkv = linear(x.reshape(B * S, D), w_qkv, b_qkv).reshape(B, S, 3 * D)
    q, kv = qkv[:, :, :D], qkv[:, :, D:]
    attn = attention(q, kv, add_mask, num_heads)                               # [B, S, D]
    out = linear(attn.reshape(B * S, D), p["o"]["w"], p["o"]["b"])
    return out.reshape(B, S, D)


def mha_cross(p, q_in, kv_in, add_mask, num_heads):
    B, Sq, D = q_in.shape
    Sk = kv_in.shape[1]
    q = linear(q_in.reshape(B * Sq, D), p["q"]["w"], p["q"]["b"]).reshape(B, Sq, D)
    w_kv = jnp.concatenate([p["k"]["w"], p["v"]["w"]], axis=1)                 # [D, 2D]
    b_kv = jnp.concatenate([p["k"]["b"], p["v"]["b"]], axis=0)
    kv = linear(kv_in.reshape(B * Sk, D), w_kv, b_kv).reshape(B, Sk, 2 * D)
    attn = attention(q, kv, add_mask, num_heads)
    out = linear(attn.reshape(B * Sq, D), p["o"]["w"], p["o"]["b"])
    return out.reshape(B, Sq, D)


# ----------------------------------------------------------------------------
# Encoder / decoder layers (post-LN residual blocks)
# ----------------------------------------------------------------------------

def encoder_layer(p, x, add_mask, num_heads):
    B, S, D = x.shape
    attn = mha_self(p["mha"], x, add_mask, num_heads)
    x2 = add_layernorm(x.reshape(B * S, D), attn.reshape(B * S, D),
                       p["ln1"]["g"], p["ln1"]["b"])                           # LN(x + attn)
    h = linear(x2, p["ff1"]["w"], p["ff1"]["b"], activation="relu")
    h = linear(h, p["ff2"]["w"], p["ff2"]["b"])
    x3 = add_layernorm(x2, h, p["ln2"]["g"], p["ln2"]["b"])                    # LN(x2 + ff)
    return x3.reshape(B, S, D)


def decoder_layer(p, x, enc_out, self_add_mask, cross_add_mask, num_heads):
    B, S, D = x.shape
    attn1 = mha_self(p["mha1"], x, self_add_mask, num_heads)
    o1 = add_layernorm(attn1.reshape(B * S, D), x.reshape(B * S, D),
                       p["ln1"]["g"], p["ln1"]["b"])                           # LN(attn1 + x)
    o1_3d = o1.reshape(B, S, D)
    attn2 = mha_cross(p["mha2"], o1_3d, enc_out, cross_add_mask, num_heads)
    o2 = add_layernorm(attn2.reshape(B * S, D), o1,
                       p["ln2"]["g"], p["ln2"]["b"])                           # LN(attn2 + o1)
    h = linear(o2, p["ff1"]["w"], p["ff1"]["b"], activation="relu")
    h = linear(h, p["ff2"]["w"], p["ff2"]["b"])
    o3 = add_layernorm(h, o2, p["ln3"]["g"], p["ln3"]["b"])                    # LN(ff + o2)
    return o3.reshape(B, S, D)


# ----------------------------------------------------------------------------
# Params / positional encoding / full forward
# ----------------------------------------------------------------------------

def _dense_init(key, fan_in, fan_out):
    kw, kb = jax.random.split(key)
    w = jax.random.normal(kw, (fan_in, fan_out), jnp.float32) * 0.02
    b = jax.random.normal(kb, (fan_out,), jnp.float32) * 0.02
    return {"w": w, "b": b}


def _mha_init(key, d_model):
    ks = jax.random.split(key, 4)
    return {
        "q": _dense_init(ks[0], d_model, d_model),
        "k": _dense_init(ks[1], d_model, d_model),
        "v": _dense_init(ks[2], d_model, d_model),
        "o": _dense_init(ks[3], d_model, d_model),
    }


def _ln_init(d_model):
    return {"g": jnp.ones((d_model,), jnp.float32),
            "b": jnp.zeros((d_model,), jnp.float32)}


def init_params(key, vocab_size, num_layers, units, d_model):
    keys = jax.random.split(key, 4 + 2 * num_layers)
    params = {
        "enc_emb": jax.random.normal(keys[0], (vocab_size, d_model), jnp.float32) * 0.02,
        "dec_emb": jax.random.normal(keys[1], (vocab_size, d_model), jnp.float32) * 0.02,
        "out": _dense_init(keys[2], d_model, vocab_size),
        "enc_layers": [],
        "dec_layers": [],
    }
    for l in range(num_layers):
        k = jax.random.split(keys[3 + l], 3)
        params["enc_layers"].append({
            "mha": _mha_init(k[0], d_model),
            "ln1": _ln_init(d_model), "ln2": _ln_init(d_model),
            "ff1": _dense_init(k[1], d_model, units),
            "ff2": _dense_init(k[2], units, d_model),
        })
    for l in range(num_layers):
        k = jax.random.split(keys[3 + num_layers + l], 4)
        params["dec_layers"].append({
            "mha1": _mha_init(k[0], d_model),
            "mha2": _mha_init(k[1], d_model),
            "ln1": _ln_init(d_model), "ln2": _ln_init(d_model), "ln3": _ln_init(d_model),
            "ff1": _dense_init(k[2], d_model, units),
            "ff2": _dense_init(k[3], units, d_model),
        })
    return params


def positional_encoding_table(max_len, d_model):
    pos = jnp.arange(max_len, dtype=jnp.float32)[:, None]
    div = jnp.exp(jnp.arange(0, d_model, 2, dtype=jnp.float32)
                  * (-math.log(10000.0) / d_model))
    pe = jnp.zeros((max_len, d_model), jnp.float32)
    pe = pe.at[:, 0::2].set(jnp.sin(pos * div))
    pe = pe.at[:, 1::2].set(jnp.cos(pos * div))
    return pe


def transformer_forward(params, inputs, dec_input, *, d_model, num_heads, pe):
    B, S_in = inputs.shape
    S_dec = dec_input.shape[1]
    vocab = params["out"]["w"].shape[1]

    # ---- masks (PadMasking semantics; additive, -1e9 where masked).
    # Kept at [B, Sm, Sk] and shared across heads inside the attention kernel
    # (never broadcast to [B*H, Sq, Sk] in HBM).
    enc_pad_add = jnp.where(inputs == 0, -1e9, 0.0).astype(jnp.float32)[:, None, :]  # [B,1,S_in]
    la = 1.0 - jnp.tril(jnp.ones((S_dec, S_dec), jnp.float32))                       # [S_dec,S_dec]
    dec_pad_f = (dec_input == 0).astype(jnp.float32)[:, None, :]                     # [B,1,S_dec]
    look_ahead = jnp.maximum(la[None, :, :], dec_pad_f) > 0                          # [B,S_dec,S_dec]
    dec_self_add = jnp.where(look_ahead, -1e9, 0.0).astype(jnp.float32)

    # ---- encoder: pos_enc(emb(x)) then * sqrt(d_model) (order as in EncodeChat) ----
    x = params["enc_emb"][inputs]
    x = x + pe[None, :S_in, :]
    x = math.sqrt(d_model) * x
    for lp in params["enc_layers"]:
        x = encoder_layer(lp, x, enc_pad_add, num_heads)
    enc_outputs = x

    # ---- decoder: emb * sqrt(d_model) then + PE (order as in DecoderChat) ----
    y = params["dec_emb"][dec_input] * math.sqrt(d_model)
    y = y + pe[None, :S_dec, :]
    for lp in params["dec_layers"]:
        y = decoder_layer(lp, y, enc_outputs, dec_self_add, enc_pad_add, num_heads)

    # ---- final projection to vocab (N-tiled by the shared linear) ----
    logits = linear(y.reshape(B * S_dec, d_model), params["out"]["w"], params["out"]["b"])
    return logits.reshape(B, S_dec, vocab)


# ----------------------------------------------------------------------------
# Main
# ----------------------------------------------------------------------------

if __name__ == "__main__":
    vocab_size = 64
    num_layers = 2
    units = 64
    d_model = 32
    num_heads = 4
    batch, seq = 2, 8

    key = jax.random.PRNGKey(0)
    k_params, k_in, k_dec = jax.random.split(key, 3)

    params = init_params(k_params, vocab_size, num_layers, units, d_model)
    pe = positional_encoding_table(vocab_size, d_model)

    # Token ids with some zeros (PAD) so the padding masks are exercised.
    inputs = jax.random.randint(k_in, (batch, seq), 0, vocab_size, dtype=jnp.int32)
    inputs = inputs.at[:, -2:].set(0)
    dec_input = jax.random.randint(k_dec, (batch, seq), 0, vocab_size, dtype=jnp.int32)
    dec_input = dec_input.at[:, -1:].set(0)

    fwd = jax.jit(functools.partial(transformer_forward,
                                    d_model=d_model, num_heads=num_heads, pe=pe))
    logits = fwd(params, inputs, dec_input)
    jax.block_until_ready(logits)

    assert logits.shape == (batch, seq, vocab_size)
    assert bool(jnp.all(jnp.isfinite(logits)))
    print("KERNEL_OK")
</pallas_src>

<mosaic_0001>
module attributes {stable_mosaic.version = 11 : i64} {
  func.func @_matmul_kernel(%arg0: i32, %arg1: i32, %arg2: i32, %arg3: memref<16x32xf32, #tpu.memory_space<vmem>>, %arg4: memref<32x96xf32, #tpu.memory_space<vmem>>, %arg5: memref<1x96xf32, #tpu.memory_space<vmem>>, %arg6: memref<16x96xf32, #tpu.memory_space<vmem>>, %arg7: memref<16x96xf32, #tpu.memory_space<vmem>>) attributes {dimension_semantics = [#tpu.dimension_semantics<parallel>, #tpu.dimension_semantics<parallel>, #tpu.dimension_semantics<arbitrary>], iteration_bounds = array<i64: 1, 1, 1>, scalar_prefetch = 0 : i64, scratch_operands = 1 : i64, tpu.core_type = #tpu.core_type<tc>, window_params = [{transform_indices = @transform_0, window_bounds = array<i64: 16, 32>}, {transform_indices = @transform_1, window_bounds = array<i64: 32, 96>}, {transform_indices = @transform_2, window_bounds = array<i64: 1, 96>}, {transform_indices = @transform_3, window_bounds = array<i64: 16, 96>}]} {
    %c0_i32 = arith.constant 0 : i32
    %0 = arith.cmpi eq, %arg2, %c0_i32 : i32
    %1 = arith.extui %0 : i1 to i32
    %c0_i32_0 = arith.constant 0 : i32
    %2 = arith.cmpi ne, %1, %c0_i32_0 : i32
    scf.if %2 {
      %cst_10 = arith.constant 0.000000e+00 : f32
      %12 = vector.broadcast %cst_10 : f32 to vector<16x96xf32>
      %c0_11 = arith.constant 0 : index
      %c0_12 = arith.constant 0 : index
      %13 = vector.load %arg7[%c0_11, %c0_12] : memref<16x96xf32, #tpu.memory_space<vmem>>, vector<16x96xf32>
      tpu.vector_store %arg7[%c0_11, %c0_12], %12 {strides = array<i32>} : memref<16x96xf32, #tpu.memory_space<vmem>>, vector<16x96xf32>,
    } else {
    }
    %c0 = arith.constant 0 : index
    %c0_1 = arith.constant 0 : index
    %3 = vector.load %arg7[%c0, %c0_1] : memref<16x96xf32, #tpu.memory_space<vmem>>, vector<16x96xf32>
    %c0_2 = arith.constant 0 : index
    %c0_3 = arith.constant 0 : index
    %4 = vector.load %arg3[%c0_2, %c0_3] : memref<16x32xf32, #tpu.memory_space<vmem>>, vector<16x32xf32>
    %c0_4 = arith.constant 0 : index
    %c0_5 = arith.constant 0 : index
    %5 = vector.load %arg4[%c0_4, %c0_5] : memref<32x96xf32, #tpu.memory_space<vmem>>, vector<32x96xf32>
    %cst = arith.constant dense<0.000000e+00> : vector<16x96xf32>
    %6 = tpu.matmul %4, %5, %cst {dimension_numbers = #tpu.dot_dimension_numbers<[1], [0], [0], [1], [0, 0, 1, 1], [], []>} : vector<16x32xf32>, vector<32x96xf32>, vector<16x96xf32> -> vector<16x96xf32>
    %7 = arith.addf %3, %6 : vector<16x96xf32>
    %c0_6 = arith.constant 0 : index
    %c0_7 = arith.constant 0 : index
    %8 = vector.load %arg7[%c0_6, %c0_7] : memref<16x96xf32, #tpu.memory_space<vmem>>, vector<16x96xf32>
    tpu.vector_store %arg7[%c0_6, %c0_7], %7 {strides = array<i32>} : memref<16x96xf32, #tpu.memory_space<vmem>>, vector<16x96xf32>,
    %c0_i32_8 = arith.constant 0 : i32
    %9 = arith.cmpi eq, %arg2, %c0_i32_8 : i32
    %10 = arith.extui %9 : i1 to i32
    %c0_i32_9 = arith.constant 0 : i32
    %11 = arith.cmpi ne, %10, %c0_i32_9 : i32
    scf.if %11 {
      %c0_10 = arith.constant 0 : index
      %c0_11 = arith.constant 0 : index
      %12 = vector.load %arg7[%c0_10, %c0_11] : memref<16x96xf32, #tpu.memory_space<vmem>>, vector<16x96xf32>
      %c0_12 = arith.constant 0 : index
      %c0_13 = arith.constant 0 : index
      %13 = vector.load %arg5[%c0_12, %c0_13] : memref<1x96xf32, #tpu.memory_space<vmem>>, vector<1x96xf32>
      %14 = vector.broadcast %13 : vector<1x96xf32> to vector<16x96xf32>
      %15 = arith.addf %12, %14 : vector<16x96xf32>
      %c0_14 = arith.constant 0 : index
      %c0_15 = arith.constant 0 : index
      %16 = vector.load %arg6[%c0_14, %c0_15] : memref<16x96xf32, #tpu.memory_space<vmem>>, vector<16x96xf32>
      tpu.vector_store %arg6[%c0_14, %c0_15], %15 {strides = array<i32>} : memref<16x96xf32, #tpu.memory_space<vmem>>, vector<16x96xf32>,
    } else {
    }
    return
  }
  func.func @transform_0(%arg0: i32, %arg1: i32, %arg2: i32) -> (i32, i32) {
    %c0_i32 = arith.constant 0 : i32
    return %arg0, %arg2 : i32, i32
  }
  func.func @transform_1(%arg0: i32, %arg1: i32, %arg2: i32) -> (i32, i32) {
    %c0_i32 = arith.constant 0 : i32
    return %arg2, %arg1 : i32, i32
  }
  func.func @transform_2(%arg0: i32, %arg1: i32, %arg2: i32) -> (i32, i32) {
    %c0_i32 = arith.constant 0 : i32
    %c0_i32_0 = arith.constant 0 : i32
    return %c0_i32, %arg1 : i32, i32
  }
  func.func @transform_3(%arg0: i32, %arg1: i32, %arg2: i32) -> (i32, i32) {
    %c0_i32 = arith.constant 0 : i32
    return %arg0, %arg1 : i32, i32
  }
}

module attributes {stable_mosaic.version = 11 : i64} {
  func.func @_attention_kernel(%arg0: i32, %arg1: memref<1x8x32xf32, #tpu.memory_space<vmem>>, %arg2: memref<1x8x64xf32, #tpu.memory_space<vmem>>, %arg3: memref<1x1x8xf32, #tpu.memory_space<vmem>>, %arg4: memref<1x8x32xf32, #tpu.memory_space<vmem>>) attributes {dimension_semantics = [#tpu.dimension_semantics<parallel>], iteration_bounds = array<i64: 2>, scalar_prefetch = 0 : i64, scratch_operands = 0 : i64, tpu.core_type = #tpu.core_type<tc>, window_params = [{transform_indices = @transform_0, window_bounds = array<i64: 1, 8, 32>}, {transform_indices = @transform_1, window_bounds = array<i64: 1, 8, 64>}, {transform_indices = @transform_2, window_bounds = array<i64: 1, 1, 8>}, {transform_indices = @transform_3, window_bounds = array<i64: 1, 8, 32>}]} {
    %c0 = arith.constant 0 : index
    %c0_0 = arith.constant 0 : index
    %c0_1 = arith.constant 0 : index
    %0 = vector.load %arg1[%c0, %c0_0, %c0_1] : memref<1x8x32xf32, #tpu.memory_space<vmem>>, vector<1x8x32xf32>
    %1 = vector.shape_cast %0 : vector<1x8x32xf32> to vector<8x32xf32>
    %c0_2 = arith.constant 0 : index
    %c0_3 = arith.constant 0 : index
    %c0_4 = arith.constant 0 : index
    %2 = vector.load %arg2[%c0_2, %c0_3, %c0_4] : memref<1x8x64xf32, #tpu.memory_space<vmem>>, vector<1x8x64xf32>
    %3 = vector.shape_cast %2 : vector<1x8x64xf32> to vector<8x64xf32>
    %c0_5 = arith.constant 0 : index
    %c0_6 = arith.constant 0 : index
    %c0_7 = arith.constant 0 : index
    %4 = vector.load %arg3[%c0_5, %c0_6, %c0_7] : memref<1x1x8xf32, #tpu.memory_space<vmem>>, vector<1x1x8xf32>
    %5 = vector.shape_cast %4 : vector<1x1x8xf32> to vector<1x8xf32>
    %6 = vector.extract_strided_slice %1 {offsets = [0, 0], sizes = [8, 8], strides = [1, 1]} : vector<8x32xf32> to vector<8x8xf32>
    %7 = vector.extract_strided_slice %3 {offsets = [0, 0], sizes = [8, 8], strides = [1, 1]} : vector<8x64xf32> to vector<8x8xf32>
    %8 = vector.extract_strided_slice %3 {offsets = [0, 32], sizes = [8, 8], strides = [1, 1]} : vector<8x64xf32> to vector<8x8xf32>
    "tpu.trace_start"() <{level = 10 : i32, message = "qd,kd->qk"}> : () -> ()
    %cst = arith.constant dense<0.000000e+00> : vector<8x8xf32>
    %9 = tpu.matmul %6, %7, %cst {dimension_numbers = #tpu.dot_dimension_numbers<[1], [1], [0], [0], [0, 0, 1, 0], [], []>} : vector<8x8xf32>, vector<8x8xf32>, vector<8x8xf32> -> vector<8x8xf32>
    "tpu.trace_stop"() : () -> ()
    %cst_8 = arith.constant 0.353553385 : f32
    %10 = vector.broadcast %cst_8 : f32 to vector<8x8xf32>
    %11 = arith.mulf %9, %10 : vector<8x8xf32>
    %12 = vector.broadcast %5 : vector<1x8xf32> to vector<8x8xf32>
    %13 = arith.addf %11, %12 : vector<8x8xf32>
    %cst_9 = arith.constant dense<0xFF800000> : vector<8xf32>
    %14 = vector.multi_reduction <maximumf>, %13, %cst_9 [1] : vector<8x8xf32> to vector<8xf32>
    %15 = vector.shape_cast %14 : vector<8xf32> to vector<8x1xf32>
    %16 = vector.broadcast %15 : vector<8x1xf32> to vector<8x8xf32>
    %17 = arith.subf %13, %16 : vector<8x8xf32>
    %18 = math.exp %17 : vector<8x8xf32>
    %cst_10 = arith.constant dense<0.000000e+00> : vector<8xf32>
    %19 = vector.multi_reduction <add>, %18, %cst_10 [1] : vector<8x8xf32> to vector<8xf32>
    %20 = vector.shape_cast %19 : vector<8xf32> to vector<8x1xf32>
    %21 = tpu.reciprocal %20 {approx = true} : vector<8x1xf32> -> vector<8x1xf32>
    %22 = vector.broadcast %21 : vector<8x1xf32> to vector<8x8xf32>
    %23 = arith.mulf %18, %22 : vector<8x8xf32>
    %cst_11 = arith.constant dense<0.000000e+00> : vector<8x8xf32>
    %24 = tpu.matmul %23, %8, %cst_11 {dimension_numbers = #tpu.dot_dimension_numbers<[1], [0], [0], [1], [0, 0, 1, 1], [], []>} : vector<8x8xf32>, vector<8x8xf32>, vector<8x8xf32> -> vector<8x8xf32>
    %25 = vector.extract_strided_slice %1 {offsets = [0, 8], sizes = [8, 8], strides = [1, 1]} : vector<8x32xf32> to vector<8x8xf32>
    %26 = vector.extract_strided_slice %3 {offsets = [0, 8], sizes = [8, 8], strides = [1, 1]} : vector<8x64xf32> to vector<8x8xf32>
    %27 = vector.extract_strided_slice %3 {offsets = [0, 40], sizes = [8, 8], strides = [1, 1]} : vector<8x64xf32> to vector<8x8xf32>
    "tpu.trace_start"() <{level = 10 : i32, message = "qd,kd->qk"}> : () -> ()
    %cst_12 = arith.constant dense<0.000000e+00> : vector<8x8xf32>
    %28 = tpu.matmul %25, %26, %cst_12 {dimension_numbers = #tpu.dot_dimension_numbers<[1], [1], [0], [0], [0, 0, 1, 0], [], []>} : vector<8x8xf32>, vector<8x8xf32>, vector<8x8xf32> -> vector<8x8xf32>
    "tpu.trace_stop"() : () -> ()
    %cst_13 = arith.constant 0.353553385 : f32
    %29 = vector.broadcast %cst_13 : f32 to vector<8x8xf32>
    %30 = arith.mulf %28, %29 : vector<8x8xf32>
    %31 = vector.broadcast %5 : vector<1x8xf32> to vector<8x8xf32>
    %32 = arith.addf %30, %31 : vector<8x8xf32>
    %cst_14 = arith.constant dense<0xFF800000> : vector<8xf32>
    %33 = vector.multi_reduction <maximumf>, %32, %cst_14 [1] : vector<8x8xf32> to vector<8xf32>
    %34 = vector.shape_cast %33 : vector<8xf32> to vector<8x1xf32>
    %35 = vector.broadcast %34 : vector<8x1xf32> to vector<8x8xf32>
    %36 = arith.subf %32, %35 : vector<8x8xf32>
    %37 = math.exp %36 : vector<8x8xf32>
    %cst_15 = arith.constant dense<0.000000e+00> : vector<8xf32>
    %38 = vector.multi_reduction <add>, %37, %cst_15 [1] : vector<8x8xf32> to vector<8xf32>
    %39 = vector.shape_cast %38 : vector<8xf32> to vector<8x1xf32>
    %40 = tpu.reciprocal %39 {approx = true} : vector<8x1xf32> -> vector<8x1xf32>
    %41 = vector.broadcast %40 : vector<8x1xf32> to vector<8x8xf32>
    %42 = arith.mulf %37, %41 : vector<8x8xf32>
    %cst_16 = arith.constant dense<0.000000e+00> : vector<8x8xf32>
    %43 = tpu.matmul %42, %27, %cst_16 {dimension_numbers = #tpu.dot_dimension_numbers<[1], [0], [0], [1], [0, 0, 1, 1], [], []>} : vector<8x8xf32>, vector<8x8xf32>, vector<8x8xf32> -> vector<8x8xf32>
    %44 = vector.extract_strided_slice %1 {offsets = [0, 16], sizes = [8, 8], strides = [1, 1]} : vector<8x32xf32> to vector<8x8xf32>
    %45 = vector.extract_strided_slice %3 {offsets = [0, 16], sizes = [8, 8], strides = [1, 1]} : vector<8x64xf32> to vector<8x8xf32>
    %46 = vector.extract_strided_slice %3 {offsets = [0, 48], sizes = [8, 8], strides = [1, 1]} : vector<8x64xf32> to vector<8x8xf32>
    "tpu.trace_start"() <{level = 10 : i32, message = "qd,kd->qk"}> : () -> ()
    %cst_17 = arith.constant dense<0.000000e+00> : vector<8x8xf32>
    %47 = tpu.matmul %44, %45, %cst_17 {dimension_numbers = #tpu.dot_dimension_numbers<[1], [1], [0], [0], [0, 0, 1, 0], [], []>} : vector<8x8xf32>, vector<8x8xf32>, vector<8x8xf32> -> vector<8x8xf32>
    "tpu.trace_stop"() : () -> ()
    %cst_18 = arith.constant 0.353553385 : f32
    %48 = vector.broadcast %cst_18 : f32 to vector<8x8xf32>
    %49 = arith.mulf %47, %48 : vector<8x8xf32>
    %50 = vector.broadcast %5 : vector<1x8xf32> to vector<8x8xf32>
    %51 = arith.addf %49, %50 : vector<8x8xf32>
    %cst_19 = arith.constant dense<0xFF800000> : vector<8xf32>
    %52 = vector.multi_reduction <maximumf>, %51, %cst_19 [1] : vector<8x8xf32> to vector<8xf32>
    %53 = vector.shape_cast %52 : vector<8xf32> to vector<8x1xf32>
    %54 = vector.broadcast %53 : vector<8x1xf32> to vector<8x8xf32>
    %55 = arith.subf %51, %54 : vector<8x8xf32>
    %56 = math.exp %55 : vector<8x8xf32>
    %cst_20 = arith.constant dense<0.000000e+00> : vector<8xf32>
    %57 = vector.multi_reduction <add>, %56, %cst_20 [1] : vector<8x8xf32> to vector<8xf32>
    %58 = vector.shape_cast %57 : vector<8xf32> to vector<8x1xf32>
    %59 = tpu.reciprocal %58 {approx = true} : vector<8x1xf32> -> vector<8x1xf32>
    %60 = vector.broadcast %59 : vector<8x1xf32> to vector<8x8xf32>
    %61 = arith.mulf %56, %60 : vector<8x8xf32>
    %cst_21 = arith.constant dense<0.000000e+00> : vector<8x8xf32>
    %62 = tpu.matmul %61, %46, %cst_21 {dimension_numbers = #tpu.dot_dimension_numbers<[1], [0], [0], [1], [0, 0, 1, 1], [], []>} : vector<8x8xf32>, vector<8x8xf32>, vector<8x8xf32> -> vector<8x8xf32>
    %63 = vector.extract_strided_slice %1 {offsets = [0, 24], sizes = [8, 8], strides = [1, 1]} : vector<8x32xf32> to vector<8x8xf32>
    %64 = vector.extract_strided_slice %3 {offsets = [0, 24], sizes = [8, 8], strides = [1, 1]} : vector<8x64xf32> to vector<8x8xf32>
    %65 = vector.extract_strided_slice %3 {offsets = [0, 56], sizes = [8, 8], strides = [1, 1]} : vector<8x64xf32> to vector<8x8xf32>
    "tpu.trace_start"() <{level = 10 : i32, message = "qd,kd->qk"}> : () -> ()
    %cst_22 = arith.constant dense<0.000000e+00> : vector<8x8xf32>
    %66 = tpu.matmul %63, %64, %cst_22 {dimension_numbers = #tpu.dot_dimension_numbers<[1], [1], [0], [0], [0, 0, 1, 0], [], []>} : vector<8x8xf32>, vector<8x8xf32>, vector<8x8xf32> -> vector<8x8xf32>
    "tpu.trace_stop"() : () -> ()
    %cst_23 = arith.constant 0.353553385 : f32
    %67 = vector.broadcast %cst_23 : f32 to vector<8x8xf32>
    %68 = arith.mulf %66, %67 : vector<8x8xf32>
    %69 = vector.broadcast %5 : vector<1x8xf32> to vector<8x8xf32>
    %70 = arith.addf %68, %69 : vector<8x8xf32>
    %cst_24 = arith.constant dense<0xFF800000> : vector<8xf32>
    %71 = vector.multi_reduction <maximumf>, %70, %cst_24 [1] : vector<8x8xf32> to vector<8xf32>
    %72 = vector.shape_cast %71 : vector<8xf32> to vector<8x1xf32>
    %73 = vector.broadcast %72 : vector<8x1xf32> to vector<8x8xf32>
    %74 = arith.subf %70, %73 : vector<8x8xf32>
    %75 = math.exp %74 : vector<8x8xf32>
    %cst_25 = arith.constant dense<0.000000e+00> : vector<8xf32>
    %76 = vector.multi_reduction <add>, %75, %cst_25 [1] : vector<8x8xf32> to vector<8xf32>
    %77 = vector.shape_cast %76 : vector<8xf32> to vector<8x1xf32>
    %78 = tpu.reciprocal %77 {approx = true} : vector<8x1xf32> -> vector<8x1xf32>
    %79 = vector.broadcast %78 : vector<8x1xf32> to vector<8x8xf32>
    %80 = arith.mulf %75, %79 : vector<8x8xf32>
    %cst_26 = arith.constant dense<0.000000e+00> : vector<8x8xf32>
    %81 = tpu.matmul %80, %65, %cst_26 {dimension_numbers = #tpu.dot_dimension_numbers<[1], [0], [0], [1], [0, 0, 1, 1], [], []>} : vector<8x8xf32>, vector<8x8xf32>, vector<8x8xf32> -> vector<8x8xf32>
    %82 = tpu.concatenate %24, %43, %62, %81 in 1 : vector<8x8xf32>, vector<8x8xf32>, vector<8x8xf32>, vector<8x8xf32> -> vector<8x32xf32>
    %c0_27 = arith.constant 0 : index
    %c0_28 = arith.constant 0 : index
    %c0_29 = arith.constant 0 : index
    %83 = vector.load %arg4[%c0_27, %c0_28, %c0_29] : memref<1x8x32xf32, #tpu.memory_space<vmem>>, vector<1x8x32xf32>
    %84 = vector.shape_cast %83 : vector<1x8x32xf32> to vector<8x32xf32>
    %85 = vector.shape_cast %82 : vector<8x32xf32> to vector<1x8x32xf32>
    tpu.vector_store %arg4[%c0_27, %c0_28, %c0_29], %85 {strides = array<i32>} : memref<1x8x32xf32, #tpu.memory_space<vmem>>, vector<1x8x32xf32>,
    return
  }
  func.func @transform_0(%arg0: i32) -> (i32, i32, i32) {
    %c0_i32 = arith.constant 0 : i32
    %c0_i32_0 = arith.constant 0 : i32
    %c0_i32_1 = arith.constant 0 : i32
    return %arg0, %c0_i32, %c0_i32_0 : i32, i32, i32
  }
  func.func @transform_1(%arg0: i32) -> (i32, i32, i32) {
    %c0_i32 = arith.constant 0 : i32
    %c0_i32_0 = arith.constant 0 : i32
    %c0_i32_1 = arith.constant 0 : i32
    return %arg0, %c0_i32, %c0_i32_0 : i32, i32, i32
  }
  func.func @transform_2(%arg0: i32) -> (i32, i32, i32) {
    %c0_i32 = arith.constant 0 : i32
    %c0_i32_0 = arith.constant 0 : i32
    %c0_i32_1 = arith.constant 0 : i32
    return %arg0, %c0_i32, %c0_i32_0 : i32, i32, i32
  }
  func.func @transform_3(%arg0: i32) -> (i32, i32, i32) {
    %c0_i32 = arith.constant 0 : i32
    %c0_i32_0 = arith.constant 0 : i32
    %c0_i32_1 = arith.constant 0 : i32
    return %arg0, %c0_i32, %c0_i32_0 : i32, i32, i32
  }
}

module attributes {stable_mosaic.version = 11 : i64} {
  func.func @_matmul_kernel(%arg0: i32, %arg1: i32, %arg2: i32, %arg3: memref<16x32xf32, #tpu.memory_space<vmem>>, %arg4: memref<32x32xf32, #tpu.memory_space<vmem>>, %arg5: memref<1x32xf32, #tpu.memory_space<vmem>>, %arg6: memref<16x32xf32, #tpu.memory_space<vmem>>, %arg7: memref<16x32xf32, #tpu.memory_space<vmem>>) attributes {dimension_semantics = [#tpu.dimension_semantics<parallel>, #tpu.dimension_semantics<parallel>, #tpu.dimension_semantics<arbitrary>], iteration_bounds = array<i64: 1, 1, 1>, scalar_prefetch = 0 : i64, scratch_operands = 1 : i64, tpu.core_type = #tpu.core_type<tc>, window_params = [{transform_indices = @transform_0, window_bounds = array<i64: 16, 32>}, {transform_indices = @transform_1, window_bounds = array<i64: 32, 32>}, {transform_indices = @transform_2, window_bounds = array<i64: 1, 32>}, {transform_indices = @transform_3, window_bounds = array<i64: 16, 32>}]} {
    %c0_i32 = arith.constant 0 : i32
    %0 = arith.cmpi eq, %arg2, %c0_i32 : i32
    %1 = arith.extui %0 : i1 to i32
    %c0_i32_0 = arith.constant 0 : i32
    %2 = arith.cmpi ne, %1, %c0_i32_0 : i32
    scf.if %2 {
      %cst_10 = arith.constant 0.000000e+00 : f32
      %12 = vector.broadcast %cst_10 : f32 to vector<16x32xf32>
      %c0_11 = arith.constant 0 : index
      %c0_12 = arith.constant 0 : index
      %13 = vector.load %arg7[%c0_11, %c0_12] : memref<16x32xf32, #tpu.memory_space<vmem>>, vector<16x32xf32>
      tpu.vector_store %arg7[%c0_11, %c0_12], %12 {strides = array<i32>} : memref<16x32xf32, #tpu.memory_space<vmem>>, vector<16x32xf32>,
    } else {
    }
    %c0 = arith.constant 0 : index
    %c0_1 = arith.constant 0 : index
    %3 = vector.load %arg7[%c0, %c0_1] : memref<16x32xf32, #tpu.memory_space<vmem>>, vector<16x32xf32>
    %c0_2 = arith.constant 0 : index
    %c0_3 = arith.constant 0 : index
    %4 = vector.load %arg3[%c0_2, %c0_3] : memref<16x32xf32, #tpu.memory_space<vmem>>, vector<16x32xf32>
    %c0_4 = arith.constant 0 : index
    %c0_5 = arith.constant 0 : index
    %5 = vector.load %arg4[%c0_4, %c0_5] : memref<32x32xf32, #tpu.memory_space<vmem>>, vector<32x32xf32>
    %cst = arith.constant dense<0.000000e+00> : vector<16x32xf32>
    %6 = tpu.matmul %4, %5, %cst {dimension_numbers = #tpu.dot_dimension_numbers<[1], [0], [0], [1], [0, 0, 1, 1], [], []>} : vector<16x32xf32>, vector<32x32xf32>, vector<16x32xf32> -> vector<16x32xf32>
    %7 = arith.addf %3, %6 : vector<16x32xf32>
    %c0_6 = arith.constant 0 : index
    %c0_7 = arith.constant 0 : index
    %8 = vector.load %arg7[%c0_6, %c0_7] : memref<16x32xf32, #tpu.memory_space<vmem>>, vector<16x32xf32>
    tpu.vector_store %arg7[%c0_6, %c0_7], %7 {strides = array<i32>} : memref<16x32xf32, #tpu.memory_space<vmem>>, vector<16x32xf32>,
    %c0_i32_8 = arith.constant 0 : i32
    %9 = arith.cmpi eq, %arg2, %c0_i32_8 : i32
    %10 = arith.extui %9 : i1 to i32
    %c0_i32_9 = arith.constant 0 : i32
    %11 = arith.cmpi ne, %10, %c0_i32_9 : i32
    scf.if %11 {
      %c0_10 = arith.constant 0 : index
      %c0_11 = arith.constant 0 : index
      %12 = vector.load %arg7[%c0_10, %c0_11] : memref<16x32xf32, #tpu.memory_space<vmem>>, vector<16x32xf32>
      %c0_12 = arith.constant 0 : index
      %c0_13 = arith.constant 0 : index
      %13 = vector.load %arg5[%c0_12, %c0_13] : memref<1x32xf32, #tpu.memory_space<vmem>>, vector<1x32xf32>
      %14 = vector.broadcast %13 : vector<1x32xf32> to vector<16x32xf32>
      %15 = arith.addf %12, %14 : vector<16x32xf32>
      %c0_14 = arith.constant 0 : index
      %c0_15 = arith.constant 0 : index
      %16 = vector.load %arg6[%c0_14, %c0_15] : memref<16x32xf32, #tpu.memory_space<vmem>>, vector<16x32xf32>
      tpu.vector_store %arg6[%c0_14, %c0_15], %15 {strides = array<i32>} : memref<16x32xf32, #tpu.memory_space<vmem>>, vector<16x32xf32>,
    } else {
    }
    return
  }
  func.func @transform_0(%arg0: i32, %arg1: i32, %arg2: i32) -> (i32, i32) {
    %c0_i32 = arith.constant 0 : i32
    return %arg0, %arg2 : i32, i32
  }
  func.func @transform_1(%arg0: i32, %arg1: i32, %arg2: i32) -> (i32, i32) {
    %c0_i32 = arith.constant 0 : i32
    return %arg2, %arg1 : i32, i32
  }
  func.func @transform_2(%arg0: i32, %arg1: i32, %arg2: i32) -> (i32, i32) {
    %c0_i32 = arith.constant 0 : i32
    %c0_i32_0 = arith.constant 0 : i32
    return %c0_i32, %arg1 : i32, i32
  }
  func.func @transform_3(%arg0: i32, %arg1: i32, %arg2: i32) -> (i32, i32) {
    %c0_i32 = arith.constant 0 : i32
    return %arg0, %arg1 : i32, i32
  }
}

module attributes {stable_mosaic.version = 11 : i64} {
  func.func @_add_layernorm_kernel(%arg0: i32, %arg1: memref<16x32xf32, #tpu.memory_space<vmem>>, %arg2: memref<16x32xf32, #tpu.memory_space<vmem>>, %arg3: memref<1x32xf32, #tpu.memory_space<vmem>>, %arg4: memref<1x32xf32, #tpu.memory_space<vmem>>, %arg5: memref<16x32xf32, #tpu.memory_space<vmem>>) attributes {dimension_semantics = [#tpu.dimension_semantics<parallel>], iteration_bounds = array<i64: 1>, scalar_prefetch = 0 : i64, scratch_operands = 0 : i64, tpu.core_type = #tpu.core_type<tc>, window_params = [{transform_indices = @transform_0, window_bounds = array<i64: 16, 32>}, {transform_indices = @transform_1, window_bounds = array<i64: 16, 32>}, {pipeline_mode = #tpu.pipeline_mode<synchronous>, transform_indices = @transform_2, window_bounds = array<i64: 1, 32>}, {pipeline_mode = #tpu.pipeline_mode<synchronous>, transform_indices = @transform_3, window_bounds = array<i64: 1, 32>}, {transform_indices = @transform_4, window_bounds = array<i64: 16, 32>}]} {
    %c0 = arith.constant 0 : index
    %c0_0 = arith.constant 0 : index
    %0 = vector.load %arg1[%c0, %c0_0] : memref<16x32xf32, #tpu.memory_space<vmem>>, vector<16x32xf32>
    %c0_1 = arith.constant 0 : index
    %c0_2 = arith.constant 0 : index
    %1 = vector.load %arg2[%c0_1, %c0_2] : memref<16x32xf32, #tpu.memory_space<vmem>>, vector<16x32xf32>
    %2 = arith.addf %0, %1 : vector<16x32xf32>
    %cst = arith.constant dense<0.000000e+00> : vector<16xf32>
    %3 = vector.multi_reduction <add>, %2, %cst [1] : vector<16x32xf32> to vector<16xf32>
    %4 = vector.shape_cast %3 : vector<16xf32> to vector<16x1xf32>
    %cst_3 = arith.constant 3.200000e+01 : f32
    %5 = vector.broadcast %cst_3 : f32 to vector<16x1xf32>
    %6 = arith.divf %4, %5 : vector<16x1xf32>
    %7 = vector.broadcast %6 : vector<16x1xf32> to vector<16x32xf32>
    %8 = arith.subf %2, %7 : vector<16x32xf32>
    %9 = arith.mulf %8, %8 : vector<16x32xf32>
    %cst_4 = arith.constant dense<0.000000e+00> : vector<16xf32>
    %10 = vector.multi_reduction <add>, %9, %cst_4 [1] : vector<16x32xf32> to vector<16xf32>
    %11 = vector.shape_cast %10 : vector<16xf32> to vector<16x1xf32>
    %cst_5 = arith.constant 3.200000e+01 : f32
    %12 = vector.broadcast %cst_5 : f32 to vector<16x1xf32>
    %13 = arith.divf %11, %12 : vector<16x1xf32>
    %14 = vector.broadcast %6 : vector<16x1xf32> to vector<16x32xf32>
    %15 = arith.subf %2, %14 : vector<16x32xf32>
    %cst_6 = arith.constant 9.99999974E-6 : f32
    %16 = vector.broadcast %cst_6 : f32 to vector<16x1xf32>
    %17 = arith.addf %13, %16 : vector<16x1xf32>
    %18 = math.rsqrt %17 : vector<16x1xf32>
    %19 = vector.broadcast %18 : vector<16x1xf32> to vector<16x32xf32>
    %20 = arith.mulf %15, %19 : vector<16x32xf32>
    %c0_7 = arith.constant 0 : index
    %c0_8 = arith.constant 0 : index
    %21 = vector.load %arg3[%c0_7, %c0_8] : memref<1x32xf32, #tpu.memory_space<vmem>>, vector<1x32xf32>
    %22 = vector.broadcast %21 : vector<1x32xf32> to vector<16x32xf32>
    %23 = arith.mulf %20, %22 : vector<16x32xf32>
    %c0_9 = arith.constant 0 : index
    %c0_10 = arith.constant 0 : index
    %24 = vector.load %arg4[%c0_9, %c0_10] : memref<1x32xf32, #tpu.memory_space<vmem>>, vector<1x32xf32>
    %25 = vector.broadcast %24 : vector<1x32xf32> to vector<16x32xf32>
    %26 = arith.addf %23, %25 : vector<16x32xf32>
    %c0_11 = arith.constant 0 : index
    %c0_12 = arith.constant 0 : index
    %27 = vector.load %arg5[%c0_11, %c0_12] : memref<16x32xf32, #tpu.memory_space<vmem>>, vector<16x32xf32>
    tpu.vector_store %arg5[%c0_11, %c0_12], %26 {strides = array<i32>} : memref<16x32xf32, #tpu.memory_space<vmem>>, vector<16x32xf32>,
    return
  }
  func.func @transform_0(%arg0: i32) -> (i32, i32) {
    %c0_i32 = arith.constant 0 : i32
    %c0_i32_0 = arith.constant 0 : i32
    return %arg0, %c0_i32 : i32, i32
  }
  func.func @transform_1(%arg0: i32) -> (i32, i32) {
    %c0_i32 = arith.constant 0 : i32
    %c0_i32_0 = arith.constant 0 : i32
    return %arg0, %c0_i32 : i32, i32
  }
  func.func @transform_2(%arg0: i32) -> (i32, i32) {
    %c0_i32 = arith.constant 0 : i32
    %c0_i32_0 = arith.constant 0 : i32
    %c0_i32_1 = arith.constant 0 : i32
    return %c0_i32, %c0_i32_0 : i32, i32
  }
  func.func @transform_3(%arg0: i32) -> (i32, i32) {
    %c0_i32 = arith.constant 0 : i32
    %c0_i32_0 = arith.constant 0 : i32
    %c0_i32_1 = arith.constant 0 : i32
    return %c0_i32, %c0_i32_0 : i32, i32
  }
  func.func @transform_4(%arg0: i32) -> (i32, i32) {
    %c0_i32 = arith.constant 0 : i32
    %c0_i32_0 = arith.constant 0 : i32
    return %arg0, %c0_i32 : i32, i32
  }
}

module attributes {stable_mosaic.version = 11 : i64} {
  func.func @_matmul_kernel(%arg0: i32, %arg1: i32, %arg2: i32, %arg3: memref<16x64xf32, #tpu.memory_space<vmem>>, %arg4: memref<64x32xf32, #tpu.memory_space<vmem>>, %arg5: memref<1x32xf32, #tpu.memory_space<vmem>>, %arg6: memref<16x32xf32, #tpu.memory_space<vmem>>, %arg7: memref<16x32xf32, #tpu.memory_space<vmem>>) attributes {dimension_semantics = [#tpu.dimension_semantics<parallel>, #tpu.dimension_semantics<parallel>, #tpu.dimension_semantics<arbitrary>], iteration_bounds = array<i64: 1, 1, 1>, scalar_prefetch = 0 : i64, scratch_operands = 1 : i64, tpu.core_type = #tpu.core_type<tc>, window_params = [{transform_indices = @transform_0, window_bounds = array<i64: 16, 64>}, {transform_indices = @transform_1, window_bounds = array<i64: 64, 32>}, {transform_indices = @transform_2, window_bounds = array<i64: 1, 32>}, {transform_indices = @transform_3, window_bounds = array<i64: 16, 32>}]} {
    %c0_i32 = arith.constant 0 : i32
    %0 = arith.cmpi eq, %arg2, %c0_i32 : i32
    %1 = arith.extui %0 : i1 to i32
    %c0_i32_0 = arith.constant 0 : i32
    %2 = arith.cmpi ne, %1, %c0_i32_0 : i32
    scf.if %2 {
      %cst_10 = arith.constant 0.000000e+00 : f32
      %12 = vector.broadcast %cst_10 : f32 to vector<16x32xf32>
      %c0_11 = arith.constant 0 : index
      %c0_12 = arith.constant 0 : index
      %13 = vector.load %arg7[%c0_11, %c0_12] : memref<16x32xf32, #tpu.memory_space<vmem>>, vector<16x32xf32>
      tpu.vector_store %arg7[%c0_11, %c0_12], %12 {strides = array<i32>} : memref<16x32xf32, #tpu.memory_space<vmem>>, vector<16x32xf32>,
    } else {
    }
    %c0 = arith.constant 0 : index
    %c0_1 = arith.constant 0 : index
    %3 = vector.load %arg7[%c0, %c0_1] : memref<16x32xf32, #tpu.memory_space<vmem>>, vector<16x32xf32>
    %c0_2 = arith.constant 0 : index
    %c0_3 = arith.constant 0 : index
    %4 = vector.load %arg3[%c0_2, %c0_3] : memref<16x64xf32, #tpu.memory_space<vmem>>, vector<16x64xf32>
    %c0_4 = arith.constant 0 : index
    %c0_5 = arith.constant 0 : index
    %5 = vector.load %arg4[%c0_4, %c0_5] : memref<64x32xf32, #tpu.memory_space<vmem>>, vector<64x32xf32>
    %cst = arith.constant dense<0.000000e+00> : vector<16x32xf32>
    %6 = tpu.matmul %4, %5, %cst {dimension_numbers = #tpu.dot_dimension_numbers<[1], [0], [0], [1], [0, 0, 1, 1], [], []>} : vector<16x64xf32>, vector<64x32xf32>, vector<16x32xf32> -> vector<16x32xf32>
    %7 = arith.addf %3, %6 : vector<16x32xf32>
    %c0_6 = arith.constant 0 : index
    %c0_7 = arith.constant 0 : index
    %8 = vector.load %arg7[%c0_6, %c0_7] : memref<16x32xf32, #tpu.memory_space<vmem>>, vector<16x32xf32>
    tpu.vector_store %arg7[%c0_6, %c0_7], %7 {strides = array<i32>} : memref<16x32xf32, #tpu.memory_space<vmem>>, vector<16x32xf32>,
    %c0_i32_8 = arith.constant 0 : i32
    %9 = arith.cmpi eq, %arg2, %c0_i32_8 : i32
    %10 = arith.extui %9 : i1 to i32
    %c0_i32_9 = arith.constant 0 : i32
    %11 = arith.cmpi ne, %10, %c0_i32_9 : i32
    scf.if %11 {
      %c0_10 = arith.constant 0 : index
      %c0_11 = arith.constant 0 : index
      %12 = vector.load %arg7[%c0_10, %c0_11] : memref<16x32xf32, #tpu.memory_space<vmem>>, vector<16x32xf32>
      %c0_12 = arith.constant 0 : index
      %c0_13 = arith.constant 0 : index
      %13 = vector.load %arg5[%c0_12, %c0_13] : memref<1x32xf32, #tpu.memory_space<vmem>>, vector<1x32xf32>
      %14 = vector.broadcast %13 : vector<1x32xf32> to vector<16x32xf32>
      %15 = arith.addf %12, %14 : vector<16x32xf32>
      %c0_14 = arith.constant 0 : index
      %c0_15 = arith.constant 0 : index
      %16 = vector.load %arg6[%c0_14, %c0_15] : memref<16x32xf32, #tpu.memory_space<vmem>>, vector<16x32xf32>
      tpu.vector_store %arg6[%c0_14, %c0_15], %15 {strides = array<i32>} : memref<16x32xf32, #tpu.memory_space<vmem>>, vector<16x32xf32>,
    } else {
    }
    return
  }
  func.func @transform_0(%arg0: i32, %arg1: i32, %arg2: i32) -> (i32, i32) {
    %c0_i32 = arith.constant 0 : i32
    return %arg0, %arg2 : i32, i32
  }
  func.func @transform_1(%arg0: i32, %arg1: i32, %arg2: i32) -> (i32, i32) {
    %c0_i32 = arith.constant 0 : i32
    return %arg2, %arg1 : i32, i32
  }
  func.func @transform_2(%arg0: i32, %arg1: i32, %arg2: i32) -> (i32, i32) {
    %c0_i32 = arith.constant 0 : i32
    %c0_i32_0 = arith.constant 0 : i32
    return %c0_i32, %arg1 : i32, i32
  }
  func.func @transform_3(%arg0: i32, %arg1: i32, %arg2: i32) -> (i32, i32) {
    %c0_i32 = arith.constant 0 : i32
    return %arg0, %arg1 : i32, i32
  }
}

module attributes {stable_mosaic.version = 11 : i64} {
  func.func @_matmul_kernel(%arg0: i32, %arg1: i32, %arg2: i32, %arg3: memref<16x32xf32, #tpu.memory_space<vmem>>, %arg4: memref<32x64xf32, #tpu.memory_space<vmem>>, %arg5: memref<1x64xf32, #tpu.memory_space<vmem>>, %arg6: memref<16x64xf32, #tpu.memory_space<vmem>>, %arg7: memref<16x64xf32, #tpu.memory_space<vmem>>) attributes {dimension_semantics = [#tpu.dimension_semantics<parallel>, #tpu.dimension_semantics<parallel>, #tpu.dimension_semantics<arbitrary>], iteration_bounds = array<i64: 1, 1, 1>, scalar_prefetch = 0 : i64, scratch_operands = 1 : i64, tpu.core_type = #tpu.core_type<tc>, window_params = [{transform_indices = @transform_0, window_bounds = array<i64: 16, 32>}, {transform_indices = @transform_1, window_bounds = array<i64: 32, 64>}, {transform_indices = @transform_2, window_bounds = array<i64: 1, 64>}, {transform_indices = @transform_3, window_bounds = array<i64: 16, 64>}]} {
    %c0_i32 = arith.constant 0 : i32
    %0 = arith.cmpi eq, %arg2, %c0_i32 : i32
    %1 = arith.extui %0 : i1 to i32
    %c0_i32_0 = arith.constant 0 : i32
    %2 = arith.cmpi ne, %1, %c0_i32_0 : i32
    scf.if %2 {
      %cst_10 = arith.constant 0.000000e+00 : f32
      %12 = vector.broadcast %cst_10 : f32 to vector<16x64xf32>
      %c0_11 = arith.constant 0 : index
      %c0_12 = arith.constant 0 : index
      %13 = vector.load %arg7[%c0_11, %c0_12] : memref<16x64xf32, #tpu.memory_space<vmem>>, vector<16x64xf32>
      tpu.vector_store %arg7[%c0_11, %c0_12], %12 {strides = array<i32>} : memref<16x64xf32, #tpu.memory_space<vmem>>, vector<16x64xf32>,
    } else {
    }
    %c0 = arith.constant 0 : index
    %c0_1 = arith.constant 0 : index
    %3 = vector.load %arg7[%c0, %c0_1] : memref<16x64xf32, #tpu.memory_space<vmem>>, vector<16x64xf32>
    %c0_2 = arith.constant 0 : index
    %c0_3 = arith.constant 0 : index
    %4 = vector.load %arg3[%c0_2, %c0_3] : memref<16x32xf32, #tpu.memory_space<vmem>>, vector<16x32xf32>
    %c0_4 = arith.constant 0 : index
    %c0_5 = arith.constant 0 : index
    %5 = vector.load %arg4[%c0_4, %c0_5] : memref<32x64xf32, #tpu.memory_space<vmem>>, vector<32x64xf32>
    %cst = arith.constant dense<0.000000e+00> : vector<16x64xf32>
    %6 = tpu.matmul %4, %5, %cst {dimension_numbers = #tpu.dot_dimension_numbers<[1], [0], [0], [1], [0, 0, 1, 1], [], []>} : vector<16x32xf32>, vector<32x64xf32>, vector<16x64xf32> -> vector<16x64xf32>
    %7 = arith.addf %3, %6 : vector<16x64xf32>
    %c0_6 = arith.constant 0 : index
    %c0_7 = arith.constant 0 : index
    %8 = vector.load %arg7[%c0_6, %c0_7] : memref<16x64xf32, #tpu.memory_space<vmem>>, vector<16x64xf32>
    tpu.vector_store %arg7[%c0_6, %c0_7], %7 {strides = array<i32>} : memref<16x64xf32, #tpu.memory_space<vmem>>, vector<16x64xf32>,
    %c0_i32_8 = arith.constant 0 : i32
    %9 = arith.cmpi eq, %arg2, %c0_i32_8 : i32
    %10 = arith.extui %9 : i1 to i32
    %c0_i32_9 = arith.constant 0 : i32
    %11 = arith.cmpi ne, %10, %c0_i32_9 : i32
    scf.if %11 {
      %c0_10 = arith.constant 0 : index
      %c0_11 = arith.constant 0 : index
      %12 = vector.load %arg7[%c0_10, %c0_11] : memref<16x64xf32, #tpu.memory_space<vmem>>, vector<16x64xf32>
      %c0_12 = arith.constant 0 : index
      %c0_13 = arith.constant 0 : index
      %13 = vector.load %arg5[%c0_12, %c0_13] : memref<1x64xf32, #tpu.memory_space<vmem>>, vector<1x64xf32>
      %14 = vector.broadcast %13 : vector<1x64xf32> to vector<16x64xf32>
      %15 = arith.addf %12, %14 : vector<16x64xf32>
      %cst_14 = arith.constant 0.000000e+00 : f32
      %16 = vector.broadcast %cst_14 : f32 to vector<16x64xf32>
      %17 = arith.maximumf %15, %16 : vector<16x64xf32>
      %c0_15 = arith.constant 0 : index
      %c0_16 = arith.constant 0 : index
      %18 = vector.load %arg6[%c0_15, %c0_16] : memref<16x64xf32, #tpu.memory_space<vmem>>, vector<16x64xf32>
      tpu.vector_store %arg6[%c0_15, %c0_16], %17 {strides = array<i32>} : memref<16x64xf32, #tpu.memory_space<vmem>>, vector<16x64xf32>,
    } else {
    }
    return
  }
  func.func @transform_0(%arg0: i32, %arg1: i32, %arg2: i32) -> (i32, i32) {
    %c0_i32 = arith.constant 0 : i32
    return %arg0, %arg2 : i32, i32
  }
  func.func @transform_1(%arg0: i32, %arg1: i32, %arg2: i32) -> (i32, i32) {
    %c0_i32 = arith.constant 0 : i32
    return %arg2, %arg1 : i32, i32
  }
  func.func @transform_2(%arg0: i32, %arg1: i32, %arg2: i32) -> (i32, i32) {
    %c0_i32 = arith.constant 0 : i32
    %c0_i32_0 = arith.constant 0 : i32
    return %c0_i32, %arg1 : i32, i32
  }
  func.func @transform_3(%arg0: i32, %arg1: i32, %arg2: i32) -> (i32, i32) {
    %c0_i32 = arith.constant 0 : i32
    return %arg0, %arg1 : i32, i32
  }
}

module attributes {stable_mosaic.version = 11 : i64} {
  func.func @_attention_kernel(%arg0: i32, %arg1: memref<1x8x32xf32, #tpu.memory_space<vmem>>, %arg2: memref<1x8x64xf32, #tpu.memory_space<vmem>>, %arg3: memref<1x8x8xf32, #tpu.memory_space<vmem>>, %arg4: memref<1x8x32xf32, #tpu.memory_space<vmem>>) attributes {dimension_semantics = [#tpu.dimension_semantics<parallel>], iteration_bounds = array<i64: 2>, scalar_prefetch = 0 : i64, scratch_operands = 0 : i64, tpu.core_type = #tpu.core_type<tc>, window_params = [{transform_indices = @transform_0, window_bounds = array<i64: 1, 8, 32>}, {transform_indices = @transform_1, window_bounds = array<i64: 1, 8, 64>}, {transform_indices = @transform_2, window_bounds = array<i64: 1, 8, 8>}, {transform_indices = @transform_3, window_bounds = array<i64: 1, 8, 32>}]} {
    %c0 = arith.constant 0 : index
    %c0_0 = arith.constant 0 : index
    %c0_1 = arith.constant 0 : index
    %0 = vector.load %arg1[%c0, %c0_0, %c0_1] : memref<1x8x32xf32, #tpu.memory_space<vmem>>, vector<1x8x32xf32>
    %1 = vector.shape_cast %0 : vector<1x8x32xf32> to vector<8x32xf32>
    %c0_2 = arith.constant 0 : index
    %c0_3 = arith.constant 0 : index
    %c0_4 = arith.constant 0 : index
    %2 = vector.load %arg2[%c0_2, %c0_3, %c0_4] : memref<1x8x64xf32, #tpu.memory_space<vmem>>, vector<1x8x64xf32>
    %3 = vector.shape_cast %2 : vector<1x8x64xf32> to vector<8x64xf32>
    %c0_5 = arith.constant 0 : index
    %c0_6 = arith.constant 0 : index
    %c0_7 = arith.constant 0 : index
    %4 = vector.load %arg3[%c0_5, %c0_6, %c0_7] : memref<1x8x8xf32, #tpu.memory_space<vmem>>, vector<1x8x8xf32>
    %5 = vector.shape_cast %4 : vector<1x8x8xf32> to vector<8x8xf32>
    %6 = vector.extract_strided_slice %1 {offsets = [0, 0], sizes = [8, 8], strides = [1, 1]} : vector<8x32xf32> to vector<8x8xf32>
    %7 = vector.extract_strided_slice %3 {offsets = [0, 0], sizes = [8, 8], strides = [1, 1]} : vector<8x64xf32> to vector<8x8xf32>
    %8 = vector.extract_strided_slice %3 {offsets = [0, 32], sizes = [8, 8], strides = [1, 1]} : vector<8x64xf32> to vector<8x8xf32>
    "tpu.trace_start"() <{level = 10 : i32, message = "qd,kd->qk"}> : () -> ()
    %cst = arith.constant dense<0.000000e+00> : vector<8x8xf32>
    %9 = tpu.matmul %6, %7, %cst {dimension_numbers = #tpu.dot_dimension_numbers<[1], [1], [0], [0], [0, 0, 1, 0], [], []>} : vector<8x8xf32>, vector<8x8xf32>, vector<8x8xf32> -> vector<8x8xf32>
    "tpu.trace_stop"() : () -> ()
    %cst_8 = arith.constant 0.353553385 : f32
    %10 = vector.broadcast %cst_8 : f32 to vector<8x8xf32>
    %11 = arith.mulf %9, %10 : vector<8x8xf32>
    %12 = arith.addf %11, %5 : vector<8x8xf32>
    %cst_9 = arith.constant dense<0xFF800000> : vector<8xf32>
    %13 = vector.multi_reduction <maximumf>, %12, %cst_9 [1] : vector<8x8xf32> to vector<8xf32>
    %14 = vector.shape_cast %13 : vector<8xf32> to vector<8x1xf32>
    %15 = vector.broadcast %14 : vector<8x1xf32> to vector<8x8xf32>
    %16 = arith.subf %12, %15 : vector<8x8xf32>
    %17 = math.exp %16 : vector<8x8xf32>
    %cst_10 = arith.constant dense<0.000000e+00> : vector<8xf32>
    %18 = vector.multi_reduction <add>, %17, %cst_10 [1] : vector<8x8xf32> to vector<8xf32>
    %19 = vector.shape_cast %18 : vector<8xf32> to vector<8x1xf32>
    %20 = tpu.reciprocal %19 {approx = true} : vector<8x1xf32> -> vector<8x1xf32>
    %21 = vector.broadcast %20 : vector<8x1xf32> to vector<8x8xf32>
    %22 = arith.mulf %17, %21 : vector<8x8xf32>
    %cst_11 = arith.constant dense<0.000000e+00> : vector<8x8xf32>
    %23 = tpu.matmul %22, %8, %cst_11 {dimension_numbers = #tpu.dot_dimension_numbers<[1], [0], [0], [1], [0, 0, 1, 1], [], []>} : vector<8x8xf32>, vector<8x8xf32>, vector<8x8xf32> -> vector<8x8xf32>
    %24 = vector.extract_strided_slice %1 {offsets = [0, 8], sizes = [8, 8], strides = [1, 1]} : vector<8x32xf32> to vector<8x8xf32>
    %25 = vector.extract_strided_slice %3 {offsets = [0, 8], sizes = [8, 8], strides = [1, 1]} : vector<8x64xf32> to vector<8x8xf32>
    %26 = vector.extract_strided_slice %3 {offsets = [0, 40], sizes = [8, 8], strides = [1, 1]} : vector<8x64xf32> to vector<8x8xf32>
    "tpu.trace_start"() <{level = 10 : i32, message = "qd,kd->qk"}> : () -> ()
    %cst_12 = arith.constant dense<0.000000e+00> : vector<8x8xf32>
    %27 = tpu.matmul %24, %25, %cst_12 {dimension_numbers = #tpu.dot_dimension_numbers<[1], [1], [0], [0], [0, 0, 1, 0], [], []>} : vector<8x8xf32>, vector<8x8xf32>, vector<8x8xf32> -> vector<8x8xf32>
    "tpu.trace_stop"() : () -> ()
    %cst_13 = arith.constant 0.353553385 : f32
    %28 = vector.broadcast %cst_13 : f32 to vector<8x8xf32>
    %29 = arith.mulf %27, %28 : vector<8x8xf32>
    %30 = arith.addf %29, %5 : vector<8x8xf32>
    %cst_14 = arith.constant dense<0xFF800000> : vector<8xf32>
    %31 = vector.multi_reduction <maximumf>, %30, %cst_14 [1] : vector<8x8xf32> to vector<8xf32>
    %32 = vector.shape_cast %31 : vector<8xf32> to vector<8x1xf32>
    %33 = vector.broadcast %32 : vector<8x1xf32> to vector<8x8xf32>
    %34 = arith.subf %30, %33 : vector<8x8xf32>
    %35 = math.exp %34 : vector<8x8xf32>
    %cst_15 = arith.constant dense<0.000000e+00> : vector<8xf32>
    %36 = vector.multi_reduction <add>, %35, %cst_15 [1] : vector<8x8xf32> to vector<8xf32>
    %37 = vector.shape_cast %36 : vector<8xf32> to vector<8x1xf32>
    %38 = tpu.reciprocal %37 {approx = true} : vector<8x1xf32> -> vector<8x1xf32>
    %39 = vector.broadcast %38 : vector<8x1xf32> to vector<8x8xf32>
    %40 = arith.mulf %35, %39 : vector<8x8xf32>
    %cst_16 = arith.constant dense<0.000000e+00> : vector<8x8xf32>
    %41 = tpu.matmul %40, %26, %cst_16 {dimension_numbers = #tpu.dot_dimension_numbers<[1], [0], [0], [1], [0, 0, 1, 1], [], []>} : vector<8x8xf32>, vector<8x8xf32>, vector<8x8xf32> -> vector<8x8xf32>
    %42 = vector.extract_strided_slice %1 {offsets = [0, 16], sizes = [8, 8], strides = [1, 1]} : vector<8x32xf32> to vector<8x8xf32>
    %43 = vector.extract_strided_slice %3 {offsets = [0, 16], sizes = [8, 8], strides = [1, 1]} : vector<8x64xf32> to vector<8x8xf32>
    %44 = vector.extract_strided_slice %3 {offsets = [0, 48], sizes = [8, 8], strides = [1, 1]} : vector<8x64xf32> to vector<8x8xf32>
    "tpu.trace_start"() <{level = 10 : i32, message = "qd,kd->qk"}> : () -> ()
    %cst_17 = arith.constant dense<0.000000e+00> : vector<8x8xf32>
    %45 = tpu.matmul %42, %43, %cst_17 {dimension_numbers = #tpu.dot_dimension_numbers<[1], [1], [0], [0], [0, 0, 1, 0], [], []>} : vector<8x8xf32>, vector<8x8xf32>, vector<8x8xf32> -> vector<8x8xf32>
    "tpu.trace_stop"() : () -> ()
    %cst_18 = arith.constant 0.353553385 : f32
    %46 = vector.broadcast %cst_18 : f32 to vector<8x8xf32>
    %47 = arith.mulf %45, %46 : vector<8x8xf32>
    %48 = arith.addf %47, %5 : vector<8x8xf32>
    %cst_19 = arith.constant dense<0xFF800000> : vector<8xf32>
    %49 = vector.multi_reduction <maximumf>, %48, %cst_19 [1] : vector<8x8xf32> to vector<8xf32>
    %50 = vector.shape_cast %49 : vector<8xf32> to vector<8x1xf32>
    %51 = vector.broadcast %50 : vector<8x1xf32> to vector<8x8xf32>
    %52 = arith.subf %48, %51 : vector<8x8xf32>
    %53 = math.exp %52 : vector<8x8xf32>
    %cst_20 = arith.constant dense<0.000000e+00> : vector<8xf32>
    %54 = vector.multi_reduction <add>, %53, %cst_20 [1] : vector<8x8xf32> to vector<8xf32>
    %55 = vector.shape_cast %54 : vector<8xf32> to vector<8x1xf32>
    %56 = tpu.reciprocal %55 {approx = true} : vector<8x1xf32> -> vector<8x1xf32>
    %57 = vector.broadcast %56 : vector<8x1xf32> to vector<8x8xf32>
    %58 = arith.mulf %53, %57 : vector<8x8xf32>
    %cst_21 = arith.constant dense<0.000000e+00> : vector<8x8xf32>
    %59 = tpu.matmul %58, %44, %cst_21 {dimension_numbers = #tpu.dot_dimension_numbers<[1], [0], [0], [1], [0, 0, 1, 1], [], []>} : vector<8x8xf32>, vector<8x8xf32>, vector<8x8xf32> -> vector<8x8xf32>
    %60 = vector.extract_strided_slice %1 {offsets = [0, 24], sizes = [8, 8], strides = [1, 1]} : vector<8x32xf32> to vector<8x8xf32>
    %61 = vector.extract_strided_slice %3 {offsets = [0, 24], sizes = [8, 8], strides = [1, 1]} : vector<8x64xf32> to vector<8x8xf32>
    %62 = vector.extract_strided_slice %3 {offsets = [0, 56], sizes = [8, 8], strides = [1, 1]} : vector<8x64xf32> to vector<8x8xf32>
    "tpu.trace_start"() <{level = 10 : i32, message = "qd,kd->qk"}> : () -> ()
    %cst_22 = arith.constant dense<0.000000e+00> : vector<8x8xf32>
    %63 = tpu.matmul %60, %61, %cst_22 {dimension_numbers = #tpu.dot_dimension_numbers<[1], [1], [0], [0], [0, 0, 1, 0], [], []>} : vector<8x8xf32>, vector<8x8xf32>, vector<8x8xf32> -> vector<8x8xf32>
    "tpu.trace_stop"() : () -> ()
    %cst_23 = arith.constant 0.353553385 : f32
    %64 = vector.broadcast %cst_23 : f32 to vector<8x8xf32>
    %65 = arith.mulf %63, %64 : vector<8x8xf32>
    %66 = arith.addf %65, %5 : vector<8x8xf32>
    %cst_24 = arith.constant dense<0xFF800000> : vector<8xf32>
    %67 = vector.multi_reduction <maximumf>, %66, %cst_24 [1] : vector<8x8xf32> to vector<8xf32>
    %68 = vector.shape_cast %67 : vector<8xf32> to vector<8x1xf32>
    %69 = vector.broadcast %68 : vector<8x1xf32> to vector<8x8xf32>
    %70 = arith.subf %66, %69 : vector<8x8xf32>
    %71 = math.exp %70 : vector<8x8xf32>
    %cst_25 = arith.constant dense<0.000000e+00> : vector<8xf32>
    %72 = vector.multi_reduction <add>, %71, %cst_25 [1] : vector<8x8xf32> to vector<8xf32>
    %73 = vector.shape_cast %72 : vector<8xf32> to vector<8x1xf32>
    %74 = tpu.reciprocal %73 {approx = true} : vector<8x1xf32> -> vector<8x1xf32>
    %75 = vector.broadcast %74 : vector<8x1xf32> to vector<8x8xf32>
    %76 = arith.mulf %71, %75 : vector<8x8xf32>
    %cst_26 = arith.constant dense<0.000000e+00> : vector<8x8xf32>
    %77 = tpu.matmul %76, %62, %cst_26 {dimension_numbers = #tpu.dot_dimension_numbers<[1], [0], [0], [1], [0, 0, 1, 1], [], []>} : vector<8x8xf32>, vector<8x8xf32>, vector<8x8xf32> -> vector<8x8xf32>
    %78 = tpu.concatenate %23, %41, %59, %77 in 1 : vector<8x8xf32>, vector<8x8xf32>, vector<8x8xf32>, vector<8x8xf32> -> vector<8x32xf32>
    %c0_27 = arith.constant 0 : index
    %c0_28 = arith.constant 0 : index
    %c0_29 = arith.constant 0 : index
    %79 = vector.load %arg4[%c0_27, %c0_28, %c0_29] : memref<1x8x32xf32, #tpu.memory_space<vmem>>, vector<1x8x32xf32>
    %80 = vector.shape_cast %79 : vector<1x8x32xf32> to vector<8x32xf32>
    %81 = vector.shape_cast %78 : vector<8x32xf32> to vector<1x8x32xf32>
    tpu.vector_store %arg4[%c0_27, %c0_28, %c0_29], %81 {strides = array<i32>} : memref<1x8x32xf32, #tpu.memory_space<vmem>>, vector<1x8x32xf32>,
    return
  }
  func.func @transform_0(%arg0: i32) -> (i32, i32, i32) {
    %c0_i32 = arith.constant 0 : i32
    %c0_i32_0 = arith.constant 0 : i32
    %c0_i32_1 = arith.constant 0 : i32
    return %arg0, %c0_i32, %c0_i32_0 : i32, i32, i32
  }
  func.func @transform_1(%arg0: i32) -> (i32, i32, i32) {
    %c0_i32 = arith.constant 0 : i32
    %c0_i32_0 = arith.constant 0 : i32
    %c0_i32_1 = arith.constant 0 : i32
    return %arg0, %c0_i32, %c0_i32_0 : i32, i32, i32
  }
  func.func @transform_2(%arg0: i32) -> (i32, i32, i32) {
    %c0_i32 = arith.constant 0 : i32
    %c0_i32_0 = arith.constant 0 : i32
    %c0_i32_1 = arith.constant 0 : i32
    return %arg0, %c0_i32, %c0_i32_0 : i32, i32, i32
  }
  func.func @transform_3(%arg0: i32) -> (i32, i32, i32) {
    %c0_i32 = arith.constant 0 : i32
    %c0_i32_0 = arith.constant 0 : i32
    %c0_i32_1 = arith.constant 0 : i32
    return %arg0, %c0_i32, %c0_i32_0 : i32, i32, i32
  }
}

module attributes {stable_mosaic.version = 11 : i64} {
  func.func @_matmul_kernel(%arg0: i32, %arg1: i32, %arg2: i32, %arg3: memref<16x32xf32, #tpu.memory_space<vmem>>, %arg4: memref<32x64xf32, #tpu.memory_space<vmem>>, %arg5: memref<1x64xf32, #tpu.memory_space<vmem>>, %arg6: memref<16x64xf32, #tpu.memory_space<vmem>>, %arg7: memref<16x64xf32, #tpu.memory_space<vmem>>) attributes {dimension_semantics = [#tpu.dimension_semantics<parallel>, #tpu.dimension_semantics<parallel>, #tpu.dimension_semantics<arbitrary>], iteration_bounds = array<i64: 1, 1, 1>, scalar_prefetch = 0 : i64, scratch_operands = 1 : i64, tpu.core_type = #tpu.core_type<tc>, window_params = [{transform_indices = @transform_0, window_bounds = array<i64: 16, 32>}, {transform_indices = @transform_1, window_bounds = array<i64: 32, 64>}, {transform_indices = @transform_2, window_bounds = array<i64: 1, 64>}, {transform_indices = @transform_3, window_bounds = array<i64: 16, 64>}]} {
    %c0_i32 = arith.constant 0 : i32
    %0 = arith.cmpi eq, %arg2, %c0_i32 : i32
    %1 = arith.extui %0 : i1 to i32
    %c0_i32_0 = arith.constant 0 : i32
    %2 = arith.cmpi ne, %1, %c0_i32_0 : i32
    scf.if %2 {
      %cst_10 = arith.constant 0.000000e+00 : f32
      %12 = vector.broadcast %cst_10 : f32 to vector<16x64xf32>
      %c0_11 = arith.constant 0 : index
      %c0_12 = arith.constant 0 : index
      %13 = vector.load %arg7[%c0_11, %c0_12] : memref<16x64xf32, #tpu.memory_space<vmem>>, vector<16x64xf32>
      tpu.vector_store %arg7[%c0_11, %c0_12], %12 {strides = array<i32>} : memref<16x64xf32, #tpu.memory_space<vmem>>, vector<16x64xf32>,
    } else {
    }
    %c0 = arith.constant 0 : index
    %c0_1 = arith.constant 0 : index
    %3 = vector.load %arg7[%c0, %c0_1] : memref<16x64xf32, #tpu.memory_space<vmem>>, vector<16x64xf32>
    %c0_2 = arith.constant 0 : index
    %c0_3 = arith.constant 0 : index
    %4 = vector.load %arg3[%c0_2, %c0_3] : memref<16x32xf32, #tpu.memory_space<vmem>>, vector<16x32xf32>
    %c0_4 = arith.constant 0 : index
    %c0_5 = arith.constant 0 : index
    %5 = vector.load %arg4[%c0_4, %c0_5] : memref<32x64xf32, #tpu.memory_space<vmem>>, vector<32x64xf32>
    %cst = arith.constant dense<0.000000e+00> : vector<16x64xf32>
    %6 = tpu.matmul %4, %5, %cst {dimension_numbers = #tpu.dot_dimension_numbers<[1], [0], [0], [1], [0, 0, 1, 1], [], []>} : vector<16x32xf32>, vector<32x64xf32>, vector<16x64xf32> -> vector<16x64xf32>
    %7 = arith.addf %3, %6 : vector<16x64xf32>
    %c0_6 = arith.constant 0 : index
    %c0_7 = arith.constant 0 : index
    %8 = vector.load %arg7[%c0_6, %c0_7] : memref<16x64xf32, #tpu.memory_space<vmem>>, vector<16x64xf32>
    tpu.vector_store %arg7[%c0_6, %c0_7], %7 {strides = array<i32>} : memref<16x64xf32, #tpu.memory_space<vmem>>, vector<16x64xf32>,
    %c0_i32_8 = arith.constant 0 : i32
    %9 = arith.cmpi eq, %arg2, %c0_i32_8 : i32
    %10 = arith.extui %9 : i1 to i32
    %c0_i32_9 = arith.constant 0 : i32
    %11 = arith.cmpi ne, %10, %c0_i32_9 : i32
    scf.if %11 {
      %c0_10 = arith.constant 0 : index
      %c0_11 = arith.constant 0 : index
      %12 = vector.load %arg7[%c0_10, %c0_11] : memref<16x64xf32, #tpu.memory_space<vmem>>, vector<16x64xf32>
      %c0_12 = arith.constant 0 : index
      %c0_13 = arith.constant 0 : index
      %13 = vector.load %arg5[%c0_12, %c0_13] : memref<1x64xf32, #tpu.memory_space<vmem>>, vector<1x64xf32>
      %14 = vector.broadcast %13 : vector<1x64xf32> to vector<16x64xf32>
      %15 = arith.addf %12, %14 : vector<16x64xf32>
      %c0_14 = arith.constant 0 : index
      %c0_15 = arith.constant 0 : index
      %16 = vector.load %arg6[%c0_14, %c0_15] : memref<16x64xf32, #tpu.memory_space<vmem>>, vector<16x64xf32>
      tpu.vector_store %arg6[%c0_14, %c0_15], %15 {strides = array<i32>} : memref<16x64xf32, #tpu.memory_space<vmem>>, vector<16x64xf32>,
    } else {
    }
    return
  }
  func.func @transform_0(%arg0: i32, %arg1: i32, %arg2: i32) -> (i32, i32) {
    %c0_i32 = arith.constant 0 : i32
    return %arg0, %arg2 : i32, i32
  }
  func.func @transform_1(%arg0: i32, %arg1: i32, %arg2: i32) -> (i32, i32) {
    %c0_i32 = arith.constant 0 : i32
    return %arg2, %arg1 : i32, i32
  }
  func.func @transform_2(%arg0: i32, %arg1: i32, %arg2: i32) -> (i32, i32) {
    %c0_i32 = arith.constant 0 : i32
    %c0_i32_0 = arith.constant 0 : i32
    return %c0_i32, %arg1 : i32, i32
  }
  func.func @transform_3(%arg0: i32, %arg1: i32, %arg2: i32) -> (i32, i32) {
    %c0_i32 = arith.constant 0 : i32
    return %arg0, %arg1 : i32, i32
  }
}

module attributes {stable_mosaic.version = 11 : i64} {
  func.func @_matmul_kernel(%arg0: i32, %arg1: i32, %arg2: i32, %arg3: memref<16x32xf32, #tpu.memory_space<vmem>>, %arg4: memref<32x64xf32, #tpu.memory_space<vmem>>, %arg5: memref<1x64xf32, #tpu.memory_space<vmem>>, %arg6: memref<16x64xf32, #tpu.memory_space<vmem>>, %arg7: memref<16x64xf32, #tpu.memory_space<vmem>>) attributes {dimension_semantics = [#tpu.dimension_semantics<parallel>, #tpu.dimension_semantics<parallel>, #tpu.dimension_semantics<arbitrary>], iteration_bounds = array<i64: 1, 1, 1>, scalar_prefetch = 0 : i64, scratch_operands = 1 : i64, tpu.core_type = #tpu.core_type<tc>, window_params = [{transform_indices = @transform_0, window_bounds = array<i64: 16, 32>}, {transform_indices = @transform_1, window_bounds = array<i64: 32, 64>}, {transform_indices = @transform_2, window_bounds = array<i64: 1, 64>}, {transform_indices = @transform_3, window_bounds = array<i64: 16, 64>}]} {
    %c0_i32 = arith.constant 0 : i32
    %0 = arith.cmpi eq, %arg2, %c0_i32 : i32
    %1 = arith.extui %0 : i1 to i32
    %c0_i32_0 = arith.constant 0 : i32
    %2 = arith.cmpi ne, %1, %c0_i32_0 : i32
    scf.if %2 {
      %cst_10 = arith.constant 0.000000e+00 : f32
      %12 = vector.broadcast %cst_10 : f32 to vector<16x64xf32>
      %c0_11 = arith.constant 0 : index
      %c0_12 = arith.constant 0 : index
      %13 = vector.load %arg7[%c0_11, %c0_12] : memref<16x64xf32, #tpu.memory_space<vmem>>, vector<16x64xf32>
      tpu.vector_store %arg7[%c0_11, %c0_12], %12 {strides = array<i32>} : memref<16x64xf32, #tpu.memory_space<vmem>>, vector<16x64xf32>,
    } else {
    }
    %c0 = arith.constant 0 : index
    %c0_1 = arith.constant 0 : index
    %3 = vector.load %arg7[%c0, %c0_1] : memref<16x64xf32, #tpu.memory_space<vmem>>, vector<16x64xf32>
    %c0_2 = arith.constant 0 : index
    %c0_3 = arith.constant 0 : index
    %4 = vector.load %arg3[%c0_2, %c0_3] : memref<16x32xf32, #tpu.memory_space<vmem>>, vector<16x32xf32>
    %c0_4 = arith.constant 0 : index
    %c0_5 = arith.constant 0 : index
    %5 = vector.load %arg4[%c0_4, %c0_5] : memref<32x64xf32, #tpu.memory_space<vmem>>, vector<32x64xf32>
    %cst = arith.constant dense<0.000000e+00> : vector<16x64xf32>
    %6 = tpu.matmul %4, %5, %cst {dimension_numbers = #tpu.dot_dimension_numbers<[1], [0], [0], [1], [0, 0, 1, 1], [], []>} : vector<16x32xf32>, vector<32x64xf32>, vector<16x64xf32> -> vector<16x64xf32>
    %7 = arith.addf %3, %6 : vector<16x64xf32>
    %c0_6 = arith.constant 0 : index
    %c0_7 = arith.constant 0 : index
    %8 = vector.load %arg7[%c0_6, %c0_7] : memref<16x64xf32, #tpu.memory_space<vmem>>, vector<16x64xf32>
    tpu.vector_store %arg7[%c0_6, %c0_7], %7 {strides = array<i32>} : memref<16x64xf32, #tpu.memory_space<vmem>>, vector<16x64xf32>,
    %c0_i32_8 = arith.constant 0 : i32
    %9 = arith.cmpi eq, %arg2, %c0_i32_8 : i32
    %10 = arith.extui %9 : i1 to i32
    %c0_i32_9 = arith.constant 0 : i32
    %11 = arith.cmpi ne, %10, %c0_i32_9 : i32
    scf.if %11 {
      %c0_10 = arith.constant 0 : index
      %c0_11 = arith.constant 0 : index
      %12 = vector.load %arg7[%c0_10, %c0_11] : memref<16x64xf32, #tpu.memory_space<vmem>>, vector<16x64xf32>
      %c0_12 = arith.constant 0 : index
      %c0_13 = arith.constant 0 : index
      %13 = vector.load %arg5[%c0_12, %c0_13] : memref<1x64xf32, #tpu.memory_space<vmem>>, vector<1x64xf32>
      %14 = vector.broadcast %13 : vector<1x64xf32> to vector<16x64xf32>
      %15 = arith.addf %12, %14 : vector<16x64xf32>
      %c0_14 = arith.constant 0 : index
      %c0_15 = arith.constant 0 : index
      %16 = vector.load %arg6[%c0_14, %c0_15] : memref<16x64xf32, #tpu.memory_space<vmem>>, vector<16x64xf32>
      tpu.vector_store %arg6[%c0_14, %c0_15], %15 {strides = array<i32>} : memref<16x64xf32, #tpu.memory_space<vmem>>, vector<16x64xf32>,
    } else {
    }
    return
  }
  func.func @transform_0(%arg0: i32, %arg1: i32, %arg2: i32) -> (i32, i32) {
    %c0_i32 = arith.constant 0 : i32
    return %arg0, %arg2 : i32, i32
  }
  func.func @transform_1(%arg0: i32, %arg1: i32, %arg2: i32) -> (i32, i32) {
    %c0_i32 = arith.constant 0 : i32
    return %arg2, %arg1 : i32, i32
  }
  func.func @transform_2(%arg0: i32, %arg1: i32, %arg2: i32) -> (i32, i32) {
    %c0_i32 = arith.constant 0 : i32
    %c0_i32_0 = arith.constant 0 : i32
    return %c0_i32, %arg1 : i32, i32
  }
  func.func @transform_3(%arg0: i32, %arg1: i32, %arg2: i32) -> (i32, i32) {
    %c0_i32 = arith.constant 0 : i32
    return %arg0, %arg1 : i32, i32
  }
}

</mosaic_0001>

<bundles_post_ra>
// kernel: transformer_forward.39
= control target key start
LH: loop header
LB: loop body
LE: loop exit
PB: predicated region body
PF: predicated region fallthrough
CT: control target
= control target key end

     0   :  { %vm29_vm0 = vcmask 261120   ;;  %vm18_vm1 = vcmask 785408   ;;  %v165_v3 = vmov 0.0   ;;  %s221_s1 = inlined_call_operand.vmem [shape: f32[32,96], index: 1, kind: input, shape index: {}]   ;;  %s222_s0 = inlined_call_operand.vmem [shape: f32[16,32], index: 0, kind: input, shape index: {}]   ;;  %s223_s2 = inlined_call_operand.vmem [shape: f32[1,96], index: 2, kind: input, shape index: {}]   ;;  %s224_s3 = inlined_call_operand.vmem [shape: f32[16,96], index: 3, kind: output, shape index: {}]  }
   0x1   :  { %v25_v0 = vld [vmem:[%s221_s1] sm:$0xff]  ;;  %v26_v1 = vld [vmem:[%s221_s1 + $0x8] sm:$0xff]  ;;  %v27_v2 = vld [vmem:[%s221_s1 + $0x10] sm:$0xff]  ;;  %20 = vst.msk [vmem:[#allocation2 + $0x8] sm:$0xff] %vm18_vm1, %v165_v3 }
   0x2   :  { %19 = vst.msk [vmem:[#allocation2] sm:$0xff] %vm18_vm1, %v165_v3  ;;  %v156_v4 = vpack.c.bf16 %v26_v1, %v25_v0  ;;  %v28_v5 = vld [vmem:[%s221_s1 + $0x18] sm:$0xff]  ;;  %v23_v6 = vld [vmem:[%s222_s0] sm:$0xff]  ;;  %v24_v8 = vld [vmem:[%s222_s0 + $0x8] sm:$0xff] }
   0x3   :  { %v160_v7 = vpack.c.bf16 %v28_v5, %v27_v2  ;;  %153 = vmatprep.mubr.msk.f32.mxu0 %vm29_vm0, %v23_v6  ;;  %v138_v15 = vld [vmem:[%s223_s2] ss:$0 sm:$0xff] }
   0x4   :  { %157 = vmatprep.subr.bf16.mxu0 %v156_v4 }
   0x5   :  { %159 = vmatpush3.bf16.msra.mxu0 %v156_v4 }
   0x6   :  { %161 = vmatprep.subr.bf16.mxu0 %v160_v7 }
   0x8   :  { %v22_v9 = vld [vmem:[#allocation2 + $0x8] sm:$0xff] }
   0x9   :  { %163 = vmatpush3.bf16.msra.mxu0 %v160_v7  ;;  %v21_v10 = vld [vmem:[#allocation2] sm:$0xff] }
   0xc   :  { %154 = vmatmul.mubr.msk.f32.vlgmr.msra.gmra.mrb[0].mxu0 %vm29_vm0, %v24_v8 }
  0xdf   :  { %v155_v11 = vpop.f32.mrb[0].mxu0 }
  0xe0   :  { %v112_v12 = vadd.f32 %v155_v11, %v22_v9  ;;  %v102_v13 = vpop.f32.mrb[1].mxu0 }
  0xe1   :  { %v111_v14 = vadd.f32 %v102_v13, %v21_v10 }
  0xe2   :  { %115 = vst.msk [vmem:[#allocation2 + $0x8] sm:$0xff] %vm18_vm1, %v112_v12 }
  0xe3   :  { %114 = vst.msk [vmem:[#allocation2] sm:$0xff] %vm18_vm1, %v111_v14 }
  0xe9   :  { %v120_v16 = vld [vmem:[#allocation2 + $0x8] sm:$0xff] }
  0xea   :  { %v129_v17 = vadd.f32 %v138_v15, %v120_v16  ;;  %v119_v18 = vld [vmem:[#allocation2] sm:$0xff] }
  0xeb   :  { %v128_v19 = vadd.f32 %v138_v15, %v119_v18 }
  0xec   :  { %131 = vst.msk [vmem:[%s224_s3 + $0x8] sm:$0xff] %vm18_vm1, %v129_v17 }
  0xed   :  { %130 = vst.msk [vmem:[%s224_s3] sm:$0xff] %vm18_vm1, %v128_v19 }

// kernel: transformer_forward.41
= control target key start
LH: loop header
LB: loop body
LE: loop exit
PB: predicated region body
PF: predicated region fallthrough
CT: control target
= control target key end

     0   :  { %vm18_vm0 = vcmask 261120   ;;  %v164_v3 = vmov 0.0   ;;  %s220_s1 = inlined_call_operand.vmem [shape: f32[32,32], index: 1, kind: input, shape index: {}]   ;;  %s221_s0 = inlined_call_operand.vmem [shape: f32[16,32], index: 0, kind: input, shape index: {}]   ;;  %s222_s2 = inlined_call_operand.vmem [shape: f32[1,32], index: 2, kind: input, shape index: {}]   ;;  %s223_s3 = inlined_call_operand.vmem [shape: f32[16,32], index: 3, kind: output, shape index: {}]  }
   0x1   :  { %v25_v0 = vld [vmem:[%s220_s1] sm:$0xff]  ;;  %v26_v1 = vld [vmem:[%s220_s1 + $0x8] sm:$0xff]  ;;  %v27_v2 = vld [vmem:[%s220_s1 + $0x10] sm:$0xff]  ;;  %20 = vst.msk [vmem:[#allocation2 + $0x8] sm:$0xff] %vm18_vm0, %v164_v3 }
   0x2   :  { %19 = vst.msk [vmem:[#allocation2] sm:$0xff] %vm18_vm0, %v164_v3  ;;  %v155_v4 = vpack.c.bf16 %v26_v1, %v25_v0  ;;  %v28_v5 = vld [vmem:[%s220_s1 + $0x18] sm:$0xff]  ;;  %v23_v6 = vld [vmem:[%s221_s0] sm:$0xff]  ;;  %v24_v8 = vld [vmem:[%s221_s0 + $0x8] sm:$0xff] }
   0x3   :  { %v159_v7 = vpack.c.bf16 %v28_v5, %v27_v2  ;;  %152 = vmatprep.mubr.msk.f32.mxu0 %vm18_vm0, %v23_v6  ;;  %v137_v15 = vld [vmem:[%s222_s2] ss:$0 sm:$0xff] }
   0x4   :  { %156 = vmatprep.subr.bf16.mxu0 %v155_v4 }
   0x5   :  { %158 = vmatpush3.bf16.msra.mxu0 %v155_v4 }
   0x6   :  { %160 = vmatprep.subr.bf16.mxu0 %v159_v7 }
   0x8   :  { %v22_v9 = vld [vmem:[#allocation2 + $0x8] sm:$0xff] }
   0x9   :  { %162 = vmatpush3.bf16.msra.mxu0 %v159_v7  ;;  %v21_v10 = vld [vmem:[#allocation2] sm:$0xff] }
   0xc   :  { %153 = vmatmul.mubr.msk.f32.vlgmr.msra.gmra.mrb[0].mxu0 %vm18_vm0, %v24_v8 }
  0xdf   :  { %v154_v11 = vpop.f32.mrb[0].mxu0 }
  0xe0   :  { %v112_v12 = vadd.f32 %v154_v11, %v22_v9  ;;  %v102_v13 = vpop.f32.mrb[1].mxu0 }
  0xe1   :  { %v111_v14 = vadd.f32 %v102_v13, %v21_v10 }
  0xe2   :  { %114 = vst.msk [vmem:[#allocation2 + $0x8] sm:$0xff] %vm18_vm0, %v112_v12 }
  0xe3   :  { %113 = vst.msk [vmem:[#allocation2] sm:$0xff] %vm18_vm0, %v111_v14 }
  0xe9   :  { %v119_v16 = vld [vmem:[#allocation2 + $0x8] sm:$0xff] }
  0xea   :  { %v128_v17 = vadd.f32 %v137_v15, %v119_v16  ;;  %v118_v18 = vld [vmem:[#allocation2] sm:$0xff] }
  0xeb   :  { %v127_v19 = vadd.f32 %v137_v15, %v118_v18 }
  0xec   :  { %130 = vst.msk [vmem:[%s223_s3 + $0x8] sm:$0xff] %vm18_vm0, %v128_v17 }
  0xed   :  { %129 = vst.msk [vmem:[%s223_s3] sm:$0xff] %vm18_vm0, %v127_v19 }

// kernel: transformer_forward.42
= control target key start
LH: loop header
LB: loop body
LE: loop exit
PB: predicated region body
PF: predicated region fallthrough
CT: control target
= control target key end

     0   :  { %vm23_vm0 = vcmask 261120   ;;  %s136_s0 = inlined_call_operand.vmem [shape: f32[16,32], index: 0, kind: input, shape index: {}]   ;;  %s137_s1 = inlined_call_operand.vmem [shape: f32[16,32], index: 1, kind: input, shape index: {}]   ;;  %s138_s2 = inlined_call_operand.vmem [shape: f32[1,32], index: 2, kind: input, shape index: {}]   ;;  %s139_s3 = inlined_call_operand.vmem [shape: f32[1,32], index: 3, kind: input, shape index: {}]   ;;  %s140_s4 = inlined_call_operand.vmem [shape: f32[16,32], index: 4, kind: output, shape index: {}]  }
   0x1   :  { %v17_v0 = vld [vmem:[%s136_s0] sm:$0xff]  ;;  %v18_v2 = vld [vmem:[%s136_s0 + $0x8] sm:$0xff] }
   0x2   :  { %v19_v1 = vld [vmem:[%s137_s1] sm:$0xff]  ;;  %v20_v4 = vld [vmem:[%s137_s1 + $0x8] sm:$0xff] }
   0x3   :  { %v21_v3 = vadd.f32 %v19_v1, %v17_v0  ;;  %v22_v5 = vadd.f32 %v20_v4, %v18_v2  ;;  %v75_v25 = vld [vmem:[%s138_s2] ss:$0 sm:$0xff] }
   0x4   :  { %v76_v27 = vld [vmem:[%s139_s3] ss:$0 sm:$0xff] }
   0x5   :  { %v24_v6 = vsel %vm23_vm0, %v21_v3, 0.0  ;;  %v27_v7 = vsel %vm23_vm0, %v22_v5, 0.0 }
   0x6   :  { %25 = vadd.xlane.f32.xlu0 %v24_v6 }
   0xa   :  { %28 = vadd.xlane.f32.xlu0 %v27_v7 }
  0x93   :  { %v26_v8 = vpop.xlane.xlu0 %25 }
  0x94   :  { %v31_v9 = vmul.f32 0.03125, %v26_v8 }
  0x96   :  { %v33_v10 = vsub.f32 %v21_v3, %v31_v9 }
  0x97   :  { %v29_v11 = vpop.xlane.xlu0 %28 }
  0x98   :  { %v32_v12 = vmul.f32 0.03125, %v29_v11  ;;  %v35_v13 = vmul.f32 %v33_v10, %v33_v10 }
  0x9a   :  { %v34_v14 = vsub.f32 %v22_v5, %v32_v12  ;;  %v37_v15 = vsel %vm23_vm0, %v35_v13, 0.0 }
  0x9b   :  { %38 = vadd.xlane.f32.xlu1 %v37_v15 }
  0x9c   :  { %v36_v16 = vmul.f32 %v34_v14, %v34_v14 }
  0x9e   :  { %v40_v17 = vsel %vm23_vm0, %v36_v16, 0.0 }
  0x9f   :  { %41 = vadd.xlane.f32.xlu1 %v40_v17 }
 0x128   :  { %v39_v18 = vpop.xlane.xlu1 %38 }
 0x129   :  { %v43_v19 = vmul.f32 0.03125, %v39_v18 }
 0x12b   :  { %v45_v20 = vadd.f32 1e-05, %v43_v19 }
 0x12c   :  { %v42_v21 = vpop.xlane.xlu1 %41 }
 0x12d   :  { %77 = vrsqrt.f32 %v45_v20  ;;  %v44_v22 = vmul.f32 0.03125, %v42_v21 }
 0x12f   :  { %v46_v23 = vadd.f32 1e-05, %v44_v22 }
 0x131   :  { %79 = vrsqrt.f32 %v46_v23 }
 0x137   :  { %v78_v24 = vpop.eup %77 }
 0x138   :  { %v49_v26 = vmul.f32 %v78_v24, %v33_v10 }
 0x13a   :  { %v58_v28 = vmul.f32 %v75_v25, %v49_v26 }
 0x13b   :  { %v80_v29 = vpop.eup %79 }
 0x13c   :  { %v67_v30 = vadd.f32 %v76_v27, %v58_v28  ;;  %v50_v31 = vmul.f32 %v80_v29, %v34_v14 }
 0x13e   :  { %69 = vst.msk [vmem:[%s140_s4] sm:$0xff] %vm23_vm0, %v67_v30  ;;  %v59_v32 = vmul.f32 %v75_v25, %v50_v31 }
 0x140   :  { %v68_v33 = vadd.f32 %v76_v27, %v59_v32 }
 0x142   :  { %70 = vst.msk [vmem:[%s140_s4 + $0x8] sm:$0xff] %vm23_vm0, %v68_v33 }

// kernel: transformer_forward.40
= control target key start
LH: loop header
LB: loop body
LE: loop exit
PB: predicated region body
PF: predicated region fallthrough
CT: control target
= control target key end

     0   :  { %s1121_s12 = smov 0   ;;  %s1213_s0 = inlined_call_operand.vmem [shape: f32[2,8,32], index: 0, kind: input, shape index: {}]   ;;  %s1214_s1 = inlined_call_operand.vmem [shape: f32[2,8,64], index: 1, kind: input, shape index: {}]   ;;  %s1215_s2 = inlined_call_operand.vmem [shape: f32[2,1,8], index: 2, kind: input, shape index: {}]   ;;  %s1216_s3 = inlined_call_operand.vmem [shape: f32[2,8,32], index: 3, kind: output, shape index: {}]  }
   0x1 LB: > { %s966_s13 = sadd.s32 4294967295, %s1087_s12   ;;  %p970_p0 = scmp.ge.s32.totalorder %s1087_s12, 1  ;;  %s1087_s12 = sphi %s1121_s12, %s13_s12  }
   0x2   : > { %p153_p1 = scmp.lt.s32.totalorder %s1087_s12, 3 }
   0x4   : > { %p154_p2 = pnand %p970_p0, %p153_p1 }
   0x5   : > { %p182_p3 = scmp.lt.s32.totalorder (!%p154_p2), %s966_s13, 1  ;;  %v1089_v0 = vmov (!%p154_p2), 0.0   ;;  %vm1090_vm0 = vmmov (!%p154_p2), 0   ;;  %vm200_vm1 = vcmask (!%p154_p2), 64512   ;;  %s1091_s24 = smov (!%p154_p2), 96   ;;  %vm886_vm2 = vcmask (!%p154_p2), 130048  }
   0x6   : > { %157 = sbr.rel (%p154_p2) target bundleno = 1421 (0x58d), region = 32  ;;  %1005 = vmatprep.subr.mxu0 (!%p154_p2), %v1089_v0  ;;  %1007 = vmatprep.mubr.msk.f32.mxu0 (!%p154_p2), %vm1090_vm0, %v1089_v0  ;;  %s1092_s25 = smov (!%p154_p2), 120   ;;  %vm888_vm3 = vcmask (!%p154_p2), 195584   ;;  %vm890_vm4 = vcmask (!%p154_p2), 261120  }
   0x7   : > { %1010 = vmatprep.subr.mxu1 (!%p154_p2), %v1089_v0  ;;  %1012 = vmatprep.mubr.msk.f32.mxu1 (!%p154_p2), %vm1090_vm0, %v1089_v0  ;;  %s1093_s26 = smov (!%p154_p2), 112   ;;  %s1094_s27 = smov (!%p154_p2), 104  }
   0x8   : > { %s1095_s28 = smov (!%p154_p2), 88   ;;  %s1096_s29 = smov (!%p154_p2), 72  }
   0x9   : > { %s1097_s30 = smov (!%p154_p2), 80   ;;  %s1098_s4 = smov (!%p154_p2), 8  }
   0xa   : > { %s1099_s5 = smov (!%p154_p2), 16   ;;  %s1100_s6 = smov (!%p154_p2), 24  }
   0xd   : > { %s1218_s13 = smov (!%p182_p3, %s966_s13), 1 }
   0xe   : > { %s1135_s14 = sshll.u32 %s1218_s13, 3  ;;  %s192_s23 = scalar_lea.vmem %s1215_s2, %s1218_s13 }
   0xf   : > { %s189_s17 = scalar_lea.vmem %s1214_s1, %s1135_s14  ;;  %s185_s20 = scalar_lea.vmem %s1213_s0, %s1135_s14  ;;  %v1156_v4 = vld [vmem:[%s192_s23] ss:$0 sm:$0xff] }
  0x10   : > { %v1145_v1 = vld [vmem:[%s189_s17] sm:$0xff]  ;;  %s196_s9 = scalar_lea.vmem %s1216_s3, %s1135_s14 }
  0x11   : > { %1006 = vmatpush3.xpose.msk.msra.mxu0 %vm200_vm1, %v1145_v1  ;;  %v197_v2 = vld [vmem:[%s185_s20] sm:$0xff]  ;;  %296 = vrot.lane.b32.xlu1 %v1145_v1, %s1091_s24 }
  0x12   : > { %1020 = vmatprep.subr.mxu0 %v1089_v0 }
  0x14   : > { %1008 = vmatmul.mubr.msk.f32.vlgmr.msra.gmra.mrb[0].mxu0 %vm200_vm1, %v197_v2 }
  0x15   : > { %1022 = vmatprep.mubr.msk.f32.mxu0 %vm1090_vm0, %v1089_v0  ;;  %374 = vrot.lane.b32.xlu1 %v1145_v1, %s1092_s25 }
  0x19   : > { %541 = vrot.lane.b32.xlu1 %v1145_v1, %s1093_s26 }
  0x1d   : > { %539 = vrot.lane.b32.xlu1 %v197_v2, %s1093_s26 }
  0x21   : > { %708 = vrot.lane.b32.xlu1 %v1145_v1, %s1094_s27 }
  0x25   : > { %706 = vrot.lane.b32.xlu1 %v197_v2, %s1094_s27 }
  0x83   : > { %v297_v14 = vpop.permute.xlu1 %296 }
  0x84   : > { %1011 = vmatpush3.msra.mxu1 %v297_v14 }
  0x85   : > { %1015 = vmatprep.subr.mxu1 %v1089_v0 }
  0x87   : > { %v375_v15 = vpop.permute.xlu1 %374 }
  0x8b   : > { %v542_v17 = vpop.permute.xlu1 %541 }
  0x8f   : > { %v540_v19 = vpop.permute.xlu1 %539 }
  0x93   : > { %v709_v22 = vpop.permute.xlu1 %708 }
  0x97   : > { %v707_v23 = vpop.permute.xlu1 %706 }
  0xe7   : > { %v273_v3 = vpop.f32.mrb[0].mxu0 }
  0xe8   : > { %v277_v5 = vmul.f32 0.35355338, %v273_v3  ;;  %v1009_v6 = vpop.f32.mrb[1].mxu0 }
  0xea   : > { %v284_v7 = vadd.f32 %v1156_v4, %v277_v5 }
  0xec   : > { %v285_v8 = vsel %vm200_vm1, %v284_v7, -inf }
  0xed   : > { %286 = vmax.xlane.f32.xlu0 %v285_v8 }
 0x17a   : > { %v287_v9 = vpop.xlane.xlu0 %286 }
 0x17b   : > { %v288_v10 = vsub.f32 %v284_v7, %v287_v9 }
 0x17d   : > { %v289_v11 = vmul.f32 1.442695, %v288_v10 }
 0x17f   : > { %1065 = vpow2.f32 %v289_v11 }
 0x189   : > { %v1066_v12 = vpop.eup %1065 }
 0x18a   : > { %v291_v13 = vsel %vm200_vm1, %v1066_v12, 0.0 }
 0x18b   : > { %292 = vadd.xlane.f32.xlu0 %v291_v13 }
 0x1a1   : > { %372 = vrot.lane.b32.xlu0 %v197_v2, %s1092_s25 }
 0x218   : > { %v293_v16 = vpop.xlane.xlu0 %292 }
 0x219   : > { %1067 = vrcp.f32 %v293_v16 }
 0x21c   : > { %v373_v21 = vpop.permute.xlu0 %372 }
 0x223   : > { %v1068_v18 = vpop.eup %1067 }
 0x224   : > { %v295_v20 = vmul.f32 %v1068_v18, %v1066_v12 }
 0x226   : > { %1013 = vmatmul.mubr.msk.f32.vlgmr.msra.gmra.mrb[0].mxu1 %vm200_vm1, %v295_v20 }
 0x227   : > { %1016 = vmatpush3.xpose.msk.msra.mxu1 %vm200_vm1, %v375_v15  ;;  %1017 = vmatprep.mubr.msk.f32.mxu1 %vm1090_vm0, %v1089_v0 }
 0x228   : > { %1025 = vmatprep.subr.mxu1 %v1089_v0 }
 0x22a   : > { %1018 = vmatmul.mubr.msk.f32.vlgmr.msra.gmra.mrb[2].mxu1 %vm200_vm1, %v373_v21 }
 0x22b   : > { %1026 = vmatpush3.xpose.msk.msra.mxu1 %vm200_vm1, %v542_v17  ;;  %1027 = vmatprep.mubr.msk.f32.mxu1 %vm1090_vm0, %v1089_v0 }
 0x22c   : > { %1035 = vmatprep.subr.mxu1 %v1089_v0 }
 0x22e   : > { %1028 = vmatmul.mubr.msk.f32.vlgmr.msra.gmra.mrb[4].mxu1 %vm200_vm1, %v540_v19 }
 0x22f   : > { %1036 = vmatpush3.xpose.msk.msra.mxu1 %vm200_vm1, %v709_v22  ;;  %1037 = vmatprep.mubr.msk.f32.mxu1 %vm1090_vm0, %v1089_v0 }
 0x232   : > { %1038 = vmatmul.mubr.msk.f32.vlgmr.msra.gmra.mrb[6].mxu1 %vm200_vm1, %v707_v23 }
 0x2f9   : > { %v1181_v24 = vpop.f32.mrb[0].mxu1 }
 0x2fa   : > { %v1014_v25 = vpop.f32.mrb[1].mxu1 }
 0x2fd   : > { %v446_v26 = vpop.f32.mrb[2].mxu1 }
 0x2fe   : > { %v450_v27 = vmul.f32 0.35355338, %v446_v26  ;;  %v1019_v28 = vpop.f32.mrb[3].mxu1 }
 0x300   : > { %v451_v29 = vadd.f32 %v1156_v4, %v450_v27 }
 0x301   : > { %v613_v30 = vpop.f32.mrb[4].mxu1 }
 0x302   : > { %v617_v31 = vmul.f32 0.35355338, %v613_v30  ;;  %v1029_v32 = vpop.f32.mrb[5].mxu1  ;;  %v452_v33 = vsel %vm200_vm1, %v451_v29, -inf }
 0x303   : > { %453 = vmax.xlane.f32.xlu1 %v452_v33 }
 0x304   : > { %v618_v34 = vadd.f32 %v1156_v4, %v617_v31 }
 0x305   : > { %v780_v35 = vpop.f32.mrb[6].mxu1 }
 0x306   : > { %v784_v36 = vmul.f32 0.35355338, %v780_v35  ;;  %v1039_v37 = vpop.f32.mrb[7].mxu1  ;;  %v619_v38 = vsel %vm200_vm1, %v618_v34, -inf }
 0x307   : > { %620 = vmax.xlane.f32.xlu0 %v619_v38 }
 0x308   : > { %v785_v39 = vadd.f32 %v1156_v4, %v784_v36 }
 0x30a   : > { %v786_v40 = vsel %vm200_vm1, %v785_v39, -inf }
 0x30b   : > { %787 = vmax.xlane.f32.xlu1 %v786_v40 }
 0x31c   : > { %463 = vrot.lane.b32.xlu1 %v1145_v1, %s1095_s28 }
 0x390   : > { %v454_v41 = vpop.xlane.xlu1 %453 }
 0x391   : > { %v455_v42 = vsub.f32 %v451_v29, %v454_v41 }
 0x393   : > { %v456_v43 = vmul.f32 1.442695, %v455_v42 }
 0x394   : > { %v621_v44 = vpop.xlane.xlu0 %620 }
 0x395   : > { %1069 = vpow2.f32 %v456_v43  ;;  %v622_v45 = vsub.f32 %v618_v34, %v621_v44 }
 0x397   : > { %v623_v46 = vmul.f32 1.442695, %v622_v45 }
 0x398   : > { %v788_v47 = vpop.xlane.xlu1 %787 }
 0x399   : > { %1071 = vpow2.f32 %v623_v46  ;;  %v789_v48 = vsub.f32 %v785_v39, %v788_v47 }
 0x39b   : > { %v790_v49 = vmul.f32 1.442695, %v789_v48 }
 0x39c   : > { %v464_v50 = vpop.permute.xlu1 %463 }
 0x39d   : > { %1073 = vpow2.f32 %v790_v49  ;;  %1021 = vmatpush3.msra.mxu0 %v464_v50 }
 0x39e   : > { %1030 = vmatprep.subr.mxu0 %v1089_v0 }
 0x39f   : > { %v1070_v51 = vpop.eup %1069 }
 0x3a0   : > { %v458_v52 = vsel %vm200_vm1, %v1070_v51, 0.0 }
 0x3a1   : > { %459 = vadd.xlane.f32.xlu0 %v458_v52 }
 0x3a3   : > { %v1072_v53 = vpop.eup %1071 }
 0x3a4   : > { %v625_v54 = vsel %vm200_vm1, %v1072_v53, 0.0 }
 0x3a5   : > { %626 = vadd.xlane.f32.xlu1 %v625_v54 }
 0x3a7   : > { %v1074_v55 = vpop.eup %1073 }
 0x3a8   : > { %v792_v56 = vsel %vm200_vm1, %v1074_v55, 0.0 }
 0x3a9   : > { %793 = vadd.xlane.f32.xlu0 %v792_v56 }
 0x3b6   : > { %797 = vrot.lane.b32.xlu1 %v1145_v1, %s1096_s29 }
 0x3bf   : > { %630 = vrot.lane.b32.xlu0 %v1145_v1, %s1097_s30 }
 0x42e   : > { %v460_v57 = vpop.xlane.xlu0 %459 }
 0x42f   : > { %1075 = vrcp.f32 %v460_v57 }
 0x432   : > { %v627_v58 = vpop.xlane.xlu1 %626 }
 0x433   : > { %1077 = vrcp.f32 %v627_v58 }
 0x436   : > { %v794_v59 = vpop.xlane.xlu0 %793  ;;  %v798_v1 = vpop.permute.xlu1 %797 }
 0x437   : > { %1079 = vrcp.f32 %v794_v59 }
 0x439   : > { %v1076_v60 = vpop.eup %1075 }
 0x43a   : > { %v462_v61 = vmul.f32 %v1076_v60, %v1070_v51  ;;  %v631_v62 = vpop.permute.xlu0 %630 }
 0x43c   : > { %1023 = vmatmul.mubr.msk.f32.vlgmr.msra.gmra.mrb[2].mxu0 %vm200_vm1, %v462_v61 }
 0x43d   : > { %v1078_v63 = vpop.eup %1077  ;;  %1031 = vmatpush3.msra.mxu0 %v631_v62  ;;  %1032 = vmatprep.mubr.msk.f32.mxu0 %vm1090_vm0, %v1089_v0 }
 0x43e   : > { %v629_v2 = vmul.f32 %v1078_v63, %v1072_v53  ;;  %1040 = vmatprep.subr.mxu0 %v1089_v0 }
 0x440   : > { %1033 = vmatmul.mubr.msk.f32.vlgmr.msra.gmra.mrb[4].mxu0 %vm200_vm1, %v629_v2 }
 0x441   : > { %v1080_v3 = vpop.eup %1079  ;;  %1041 = vmatpush3.msra.mxu0 %v798_v1  ;;  %1042 = vmatprep.mubr.msk.f32.mxu0 %vm1090_vm0, %v1089_v0 }
 0x442   : > { %v796_v4 = vmul.f32 %v1080_v3, %v1074_v55 }
 0x444   : > { %1043 = vmatmul.mubr.msk.f32.vlgmr.msra.gmra.mrb[6].mxu0 %vm200_vm1, %v796_v4 }
 0x50f   : > { %v535_v5 = vpop.f32.mrb[2].mxu0 }
 0x510   : > { %874 = vrot.lane.b32.xlu1 %v535_v5, %s1098_s4  ;;  %v1024_v6 = vpop.f32.mrb[3].mxu0 }
 0x513   : > { %v702_v7 = vpop.f32.mrb[4].mxu0 }
 0x514   : > { %878 = vrot.lane.b32.xlu0 %v702_v7, %s1099_s5  ;;  %v1034_v8 = vpop.f32.mrb[5].mxu0 }
 0x517   : > { %v869_v9 = vpop.f32.mrb[6].mxu0 }
 0x518   : > { %882 = vrot.lane.b32.xlu1 %v869_v9, %s1100_s6  ;;  %v1044_v10 = vpop.f32.mrb[7].mxu0 }
 0x582   : > { %v875_v11 = vpop.permute.xlu1 %874 }
 0x583   : > { %v885_v0 = vsel %vm200_vm1, %v1181_v24, %v875_v11 }
 0x586   : > { %v879_v12 = vpop.permute.xlu0 %878 }
 0x587   : > { %v887_v13 = vsel %vm886_vm2, %v885_v0, %v879_v12 }
 0x58a   : > { %v883_v14 = vpop.permute.xlu1 %882 }
 0x58b   : > { %v889_v15 = vsel %vm888_vm3, %v887_v13, %v883_v14 }
 0x58c   : > { %891 = vst.msk [vmem:[%s196_s9] sm:$0xff] %vm890_vm4, %v889_v15 }
 0x58d PF: > { %s13_s12 = sadd.s32 1, %s1087_s12  }
 0x58e   : > { %p10_p4 = scmp.ge.s32.totalorder %s13_s12, 4  }
 0x590   :  { %12 = sbr.rel (!%p10_p4) target bundleno = 1 (0x1), region = 68 }

// kernel: transformer_forward.44
= control target key start
LH: loop header
LB: loop body
LE: loop exit
PB: predicated region body
PF: predicated region fallthrough
CT: control target
= control target key end

     0   :  { %vm18_vm0 = vcmask 261120   ;;  %vm33_vm1 = vcmask 523264   ;;  %v189_v3 = vmov 0.0   ;;  %s257_s1 = inlined_call_operand.vmem [shape: f32[64,32], index: 1, kind: input, shape index: {}]   ;;  %s258_s0 = inlined_call_operand.vmem [shape: f32[16,64], index: 0, kind: input, shape index: {}]   ;;  %s259_s2 = inlined_call_operand.vmem [shape: f32[1,32], index: 2, kind: input, shape index: {}]   ;;  %s260_s3 = inlined_call_operand.vmem [shape: f32[16,32], index: 3, kind: output, shape index: {}]  }
   0x1   :  { %v25_v0 = vld [vmem:[%s257_s1] sm:$0xff]  ;;  %v26_v1 = vld [vmem:[%s257_s1 + $0x8] sm:$0xff]  ;;  %v27_v2 = vld [vmem:[%s257_s1 + $0x10] sm:$0xff]  ;;  %20 = vst.msk [vmem:[#allocation2 + $0x8] sm:$0xff] %vm18_vm0, %v189_v3 }
   0x2   :  { %19 = vst.msk [vmem:[#allocation2] sm:$0xff] %vm18_vm0, %v189_v3  ;;  %v172_v4 = vpack.c.bf16 %v26_v1, %v25_v0  ;;  %v28_v5 = vld [vmem:[%s257_s1 + $0x18] sm:$0xff]  ;;  %v29_v7 = vld [vmem:[%s257_s1 + $0x20] sm:$0xff]  ;;  %v30_v8 = vld [vmem:[%s257_s1 + $0x28] sm:$0xff] }
   0x3   :  { %v176_v6 = vpack.c.bf16 %v28_v5, %v27_v2  ;;  %v23_v9 = vld [vmem:[%s258_s0] sm:$0xff]  ;;  %v180_v10 = vpack.c.bf16 %v30_v8, %v29_v7  ;;  %v31_v11 = vld [vmem:[%s257_s1 + $0x30] sm:$0xff]  ;;  %v32_v12 = vld [vmem:[%s257_s1 + $0x38] sm:$0xff] }
   0x4   :  { %173 = vmatprep.subr.bf16.mxu0 %v172_v4  ;;  %169 = vmatprep.mubr.msk.f32.mxu0 %vm33_vm1, %v23_v9  ;;  %v184_v13 = vpack.c.bf16 %v32_v12, %v31_v11  ;;  %v24_v14 = vld [vmem:[%s258_s0 + $0x8] sm:$0xff]  ;;  %v142_v21 = vld [vmem:[%s259_s2] ss:$0 sm:$0xff] }
   0x5   :  { %175 = vmatpush3.bf16.msra.mxu0 %v172_v4 }
   0x6   :  { %177 = vmatprep.subr.bf16.mxu0 %v176_v6 }
   0x8   :  { %v22_v15 = vld [vmem:[#allocation2 + $0x8] sm:$0xff] }
   0x9   :  { %179 = vmatpush3.bf16.msra.mxu0 %v176_v6  ;;  %v21_v16 = vld [vmem:[#allocation2] sm:$0xff] }
   0xa   :  { %181 = vmatprep.subr.bf16.mxu0 %v180_v10 }
   0xd   :  { %183 = vmatpush3.bf16.msra.mxu0 %v180_v10 }
   0xe   :  { %185 = vmatprep.subr.bf16.mxu0 %v184_v13 }
  0x11   :  { %187 = vmatpush3.bf16.msra.mxu0 %v184_v13 }
  0x14   :  { %170 = vmatmul.mubr.msk.f32.vlgmr.msra.gmra.mrb[0].mxu0 %vm33_vm1, %v24_v14 }
  0xe7   :  { %v171_v17 = vpop.f32.mrb[0].mxu0 }
  0xe8   :  { %v116_v18 = vadd.f32 %v171_v17, %v22_v15  ;;  %v106_v19 = vpop.f32.mrb[1].mxu0 }
  0xe9   :  { %v115_v20 = vadd.f32 %v106_v19, %v21_v16 }
  0xea   :  { %119 = vst.msk [vmem:[#allocation2 + $0x8] sm:$0xff] %vm18_vm0, %v116_v18 }
  0xeb   :  { %118 = vst.msk [vmem:[#allocation2] sm:$0xff] %vm18_vm0, %v115_v20 }
  0xf1   :  { %v124_v22 = vld [vmem:[#allocation2 + $0x8] sm:$0xff] }
  0xf2   :  { %v133_v23 = vadd.f32 %v142_v21, %v124_v22  ;;  %v123_v24 = vld [vmem:[#allocation2] sm:$0xff] }
  0xf3   :  { %v132_v25 = vadd.f32 %v142_v21, %v123_v24 }
  0xf4   :  { %135 = vst.msk [vmem:[%s260_s3 + $0x8] sm:$0xff] %vm18_vm0, %v133_v23 }
  0xf5   :  { %134 = vst.msk [vmem:[%s260_s3] sm:$0xff] %vm18_vm0, %v132_v25 }

// kernel: transformer_forward.43
= control target key start
LH: loop header
LB: loop body
LE: loop exit
PB: predicated region body
PF: predicated region fallthrough
CT: control target
= control target key end

     0   :  { %vm29_vm0 = vcmask 261120   ;;  %vm18_vm1 = vcmask 523264   ;;  %v167_v3 = vmov 0.0   ;;  %s223_s1 = inlined_call_operand.vmem [shape: f32[32,64], index: 1, kind: input, shape index: {}]   ;;  %s224_s0 = inlined_call_operand.vmem [shape: f32[16,32], index: 0, kind: input, shape index: {}]   ;;  %s225_s2 = inlined_call_operand.vmem [shape: f32[1,64], index: 2, kind: input, shape index: {}]   ;;  %s226_s3 = inlined_call_operand.vmem [shape: f32[16,64], index: 3, kind: output, shape index: {}]  }
   0x1   :  { %v25_v0 = vld [vmem:[%s223_s1] sm:$0xff]  ;;  %v26_v1 = vld [vmem:[%s223_s1 + $0x8] sm:$0xff]  ;;  %v27_v2 = vld [vmem:[%s223_s1 + $0x10] sm:$0xff]  ;;  %20 = vst.msk [vmem:[#allocation2 + $0x8] sm:$0xff] %vm18_vm1, %v167_v3 }
   0x2   :  { %19 = vst.msk [vmem:[#allocation2] sm:$0xff] %vm18_vm1, %v167_v3  ;;  %v158_v4 = vpack.c.bf16 %v26_v1, %v25_v0  ;;  %v28_v5 = vld [vmem:[%s223_s1 + $0x18] sm:$0xff]  ;;  %v23_v6 = vld [vmem:[%s224_s0] sm:$0xff]  ;;  %v24_v8 = vld [vmem:[%s224_s0 + $0x8] sm:$0xff] }
   0x3   :  { %v162_v7 = vpack.c.bf16 %v28_v5, %v27_v2  ;;  %155 = vmatprep.mubr.msk.f32.mxu0 %vm29_vm0, %v23_v6  ;;  %v140_v15 = vld [vmem:[%s225_s2] ss:$0 sm:$0xff] }
   0x4   :  { %159 = vmatprep.subr.bf16.mxu0 %v158_v4 }
   0x5   :  { %161 = vmatpush3.bf16.msra.mxu0 %v158_v4 }
   0x6   :  { %163 = vmatprep.subr.bf16.mxu0 %v162_v7 }
   0x8   :  { %v22_v9 = vld [vmem:[#allocation2 + $0x8] sm:$0xff] }
   0x9   :  { %165 = vmatpush3.bf16.msra.mxu0 %v162_v7  ;;  %v21_v10 = vld [vmem:[#allocation2] sm:$0xff] }
   0xc   :  { %156 = vmatmul.mubr.msk.f32.vlgmr.msra.gmra.mrb[0].mxu0 %vm29_vm0, %v24_v8 }
  0xdf   :  { %v157_v11 = vpop.f32.mrb[0].mxu0 }
  0xe0   :  { %v112_v12 = vadd.f32 %v157_v11, %v22_v9  ;;  %v102_v13 = vpop.f32.mrb[1].mxu0 }
  0xe1   :  { %v111_v14 = vadd.f32 %v102_v13, %v21_v10 }
  0xe2   :  { %115 = vst.msk [vmem:[#allocation2 + $0x8] sm:$0xff] %vm18_vm1, %v112_v12 }
  0xe3   :  { %114 = vst.msk [vmem:[#allocation2] sm:$0xff] %vm18_vm1, %v111_v14 }
  0xe9   :  { %v120_v16 = vld [vmem:[#allocation2 + $0x8] sm:$0xff] }
  0xea   :  { %v129_v17 = vadd.f32 %v140_v15, %v120_v16  ;;  %v119_v18 = vld [vmem:[#allocation2] sm:$0xff] }
  0xeb   :  { %v128_v19 = vadd.f32 %v140_v15, %v119_v18 }
  0xec   :  { %v131_v20 = vmax.f32 %v129_v17, 0.0 }
  0xed   :  { %v130_v21 = vmax.f32 %v128_v19, 0.0 }
  0xee   :  { %133 = vst.msk [vmem:[%s226_s3 + $0x8] sm:$0xff] %vm18_vm1, %v131_v20 }
  0xef   :  { %132 = vst.msk [vmem:[%s226_s3] sm:$0xff] %vm18_vm1, %v130_v21 }

// kernel: transformer_forward.58
= control target key start
LH: loop header
LB: loop body
LE: loop exit
PB: predicated region body
PF: predicated region fallthrough
CT: control target
= control target key end

     0   :  { %vm29_vm0 = vcmask 261120   ;;  %vm18_vm1 = vcmask 523264   ;;  %v165_v3 = vmov 0.0   ;;  %s221_s1 = inlined_call_operand.vmem [shape: f32[32,64], index: 1, kind: input, shape index: {}]   ;;  %s222_s0 = inlined_call_operand.vmem [shape: f32[16,32], index: 0, kind: input, shape index: {}]   ;;  %s223_s2 = inlined_call_operand.vmem [shape: f32[1,64], index: 2, kind: input, shape index: {}]   ;;  %s224_s3 = inlined_call_operand.vmem [shape: f32[16,64], index: 3, kind: output, shape index: {}]  }
   0x1   :  { %v25_v0 = vld [vmem:[%s221_s1] sm:$0xff]  ;;  %v26_v1 = vld [vmem:[%s221_s1 + $0x8] sm:$0xff]  ;;  %v27_v2 = vld [vmem:[%s221_s1 + $0x10] sm:$0xff]  ;;  %20 = vst.msk [vmem:[#allocation2 + $0x8] sm:$0xff] %vm18_vm1, %v165_v3 }
   0x2   :  { %19 = vst.msk [vmem:[#allocation2] sm:$0xff] %vm18_vm1, %v165_v3  ;;  %v156_v4 = vpack.c.bf16 %v26_v1, %v25_v0  ;;  %v28_v5 = vld [vmem:[%s221_s1 + $0x18] sm:$0xff]  ;;  %v23_v6 = vld [vmem:[%s222_s0] sm:$0xff]  ;;  %v24_v8 = vld [vmem:[%s222_s0 + $0x8] sm:$0xff] }
   0x3   :  { %v160_v7 = vpack.c.bf16 %v28_v5, %v27_v2  ;;  %153 = vmatprep.mubr.msk.f32.mxu0 %vm29_vm0, %v23_v6  ;;  %v138_v15 = vld [vmem:[%s223_s2] ss:$0 sm:$0xff] }
   0x4   :  { %157 = vmatprep.subr.bf16.mxu0 %v156_v4 }
   0x5   :  { %159 = vmatpush3.bf16.msra.mxu0 %v156_v4 }
   0x6   :  { %161 = vmatprep.subr.bf16.mxu0 %v160_v7 }
   0x8   :  { %v22_v9 = vld [vmem:[#allocation2 + $0x8] sm:$0xff] }
   0x9   :  { %163 = vmatpush3.bf16.msra.mxu0 %v160_v7  ;;  %v21_v10 = vld [vmem:[#allocation2] sm:$0xff] }
   0xc   :  { %154 = vmatmul.mubr.msk.f32.vlgmr.msra.gmra.mrb[0].mxu0 %vm29_vm0, %v24_v8 }
  0xdf   :  { %v155_v11 = vpop.f32.mrb[0].mxu0 }
  0xe0   :  { %v112_v12 = vadd.f32 %v155_v11, %v22_v9  ;;  %v102_v13 = vpop.f32.mrb[1].mxu0 }
  0xe1   :  { %v111_v14 = vadd.f32 %v102_v13, %v21_v10 }
  0xe2   :  { %115 = vst.msk [vmem:[#allocation2 + $0x8] sm:$0xff] %vm18_vm1, %v112_v12 }
  0xe3   :  { %114 = vst.msk [vmem:[#allocation2] sm:$0xff] %vm18_vm1, %v111_v14 }
  0xe9   :  { %v120_v16 = vld [vmem:[#allocation2 + $0x8] sm:$0xff] }
  0xea   :  { %v129_v17 = vadd.f32 %v138_v15, %v120_v16  ;;  %v119_v18 = vld [vmem:[#allocation2] sm:$0xff] }
  0xeb   :  { %v128_v19 = vadd.f32 %v138_v15, %v119_v18 }
  0xec   :  { %131 = vst.msk [vmem:[%s224_s3 + $0x8] sm:$0xff] %vm18_vm1, %v129_v17 }
  0xed   :  { %130 = vst.msk [vmem:[%s224_s3] sm:$0xff] %vm18_vm1, %v128_v19 }

// kernel: transformer_forward.54
= control target key start
LH: loop header
LB: loop body
LE: loop exit
PB: predicated region body
PF: predicated region fallthrough
CT: control target
= control target key end

     0   :  { %s1121_s12 = smov 0   ;;  %s1214_s0 = inlined_call_operand.vmem [shape: f32[2,8,32], index: 0, kind: input, shape index: {}]   ;;  %s1215_s1 = inlined_call_operand.vmem [shape: f32[2,8,64], index: 1, kind: input, shape index: {}]   ;;  %s1216_s2 = inlined_call_operand.vmem [shape: f32[2,8,8], index: 2, kind: input, shape index: {}]   ;;  %s1217_s3 = inlined_call_operand.vmem [shape: f32[2,8,32], index: 3, kind: output, shape index: {}]  }
   0x1 LB: > { %s966_s13 = sadd.s32 4294967295, %s1087_s12   ;;  %p970_p0 = scmp.ge.s32.totalorder %s1087_s12, 1  ;;  %s1087_s12 = sphi %s1121_s12, %s13_s12  }
   0x2   : > { %p154_p1 = scmp.lt.s32.totalorder %s1087_s12, 3 }
   0x4   : > { %p155_p2 = pnand %p970_p0, %p154_p1 }
   0x5   : > { %p184_p3 = scmp.lt.s32.totalorder (!%p155_p2), %s966_s13, 1  ;;  %v1089_v0 = vmov (!%p155_p2), 0.0   ;;  %vm1090_vm0 = vmmov (!%p155_p2), 0   ;;  %vm203_vm1 = vcmask (!%p155_p2), 64512   ;;  %s1091_s24 = smov (!%p155_p2), 96   ;;  %vm883_vm2 = vcmask (!%p155_p2), 130048  }
   0x6   : > { %158 = sbr.rel (%p155_p2) target bundleno = 1421 (0x58d), region = 32  ;;  %1005 = vmatprep.subr.mxu0 (!%p155_p2), %v1089_v0  ;;  %1007 = vmatprep.mubr.msk.f32.mxu0 (!%p155_p2), %vm1090_vm0, %v1089_v0  ;;  %s1092_s25 = smov (!%p155_p2), 120   ;;  %vm885_vm3 = vcmask (!%p155_p2), 195584   ;;  %vm887_vm4 = vcmask (!%p155_p2), 261120  }
   0x7   : > { %1010 = vmatprep.subr.mxu1 (!%p155_p2), %v1089_v0  ;;  %1012 = vmatprep.mubr.msk.f32.mxu1 (!%p155_p2), %vm1090_vm0, %v1089_v0  ;;  %s1093_s26 = smov (!%p155_p2), 112   ;;  %s1094_s27 = smov (!%p155_p2), 104  }
   0x8   : > { %s1095_s28 = smov (!%p155_p2), 88   ;;  %s1096_s29 = smov (!%p155_p2), 72  }
   0x9   : > { %s1097_s30 = smov (!%p155_p2), 80   ;;  %s1098_s4 = smov (!%p155_p2), 8  }
   0xa   : > { %s1099_s5 = smov (!%p155_p2), 16   ;;  %s1100_s6 = smov (!%p155_p2), 24  }
   0xd   : > { %s1219_s13 = smov (!%p184_p3, %s966_s13), 1 }
   0xe   : > { %s1135_s14 = sshll.u32 %s1219_s13, 3 }
   0xf   : > { %s191_s17 = scalar_lea.vmem %s1215_s1, %s1135_s14  ;;  %s187_s20 = scalar_lea.vmem %s1214_s0, %s1135_s14 }
  0x10   : > { %v1145_v1 = vld [vmem:[%s191_s17] sm:$0xff]  ;;  %s195_s23 = scalar_lea.vmem %s1216_s2, %s1135_s14  ;;  %s199_s9 = scalar_lea.vmem %s1217_s3, %s1135_s14 }
  0x11   : > { %1006 = vmatpush3.xpose.msk.msra.mxu0 %vm203_vm1, %v1145_v1  ;;  %v200_v2 = vld [vmem:[%s187_s20] sm:$0xff]  ;;  %293 = vrot.lane.b32.xlu1 %v1145_v1, %s1091_s24 }
  0x12   : > { %1020 = vmatprep.subr.mxu0 %v1089_v0  ;;  %v1157_v4 = vld [vmem:[%s195_s23] sm:$0xff] }
  0x14   : > { %1008 = vmatmul.mubr.msk.f32.vlgmr.msra.gmra.mrb[0].mxu0 %vm203_vm1, %v200_v2 }
  0x15   : > { %1022 = vmatprep.mubr.msk.f32.mxu0 %vm1090_vm0, %v1089_v0  ;;  %371 = vrot.lane.b32.xlu1 %v1145_v1, %s1092_s25 }
  0x19   : > { %538 = vrot.lane.b32.xlu1 %v1145_v1, %s1093_s26 }
  0x1d   : > { %536 = vrot.lane.b32.xlu1 %v200_v2, %s1093_s26 }
  0x21   : > { %705 = vrot.lane.b32.xlu1 %v1145_v1, %s1094_s27 }
  0x25   : > { %703 = vrot.lane.b32.xlu1 %v200_v2, %s1094_s27 }
  0x83   : > { %v294_v14 = vpop.permute.xlu1 %293 }
  0x84   : > { %1011 = vmatpush3.msra.mxu1 %v294_v14 }
  0x85   : > { %1015 = vmatprep.subr.mxu1 %v1089_v0 }
  0x87   : > { %v372_v15 = vpop.permute.xlu1 %371 }
  0x8b   : > { %v539_v17 = vpop.permute.xlu1 %538 }
  0x8f   : > { %v537_v19 = vpop.permute.xlu1 %536 }
  0x93   : > { %v706_v22 = vpop.permute.xlu1 %705 }
  0x97   : > { %v704_v23 = vpop.permute.xlu1 %703 }
  0xe7   : > { %v276_v3 = vpop.f32.mrb[0].mxu0 }
  0xe8   : > { %v280_v5 = vmul.f32 0.35355338, %v276_v3  ;;  %v1009_v6 = vpop.f32.mrb[1].mxu0 }
  0xea   : > { %v281_v7 = vadd.f32 %v280_v5, %v1157_v4 }
  0xec   : > { %v282_v8 = vsel %vm203_vm1, %v281_v7, -inf }
  0xed   : > { %283 = vmax.xlane.f32.xlu0 %v282_v8 }
 0x17a   : > { %v284_v9 = vpop.xlane.xlu0 %283 }
 0x17b   : > { %v285_v10 = vsub.f32 %v281_v7, %v284_v9 }
 0x17d   : > { %v286_v11 = vmul.f32 1.442695, %v285_v10 }
 0x17f   : > { %1065 = vpow2.f32 %v286_v11 }
 0x189   : > { %v1066_v12 = vpop.eup %1065 }
 0x18a   : > { %v288_v13 = vsel %vm203_vm1, %v1066_v12, 0.0 }
 0x18b   : > { %289 = vadd.xlane.f32.xlu0 %v288_v13 }
 0x1a1   : > { %369 = vrot.lane.b32.xlu0 %v200_v2, %s1092_s25 }
 0x218   : > { %v290_v16 = vpop.xlane.xlu0 %289 }
 0x219   : > { %1067 = vrcp.f32 %v290_v16 }
 0x21c   : > { %v370_v21 = vpop.permute.xlu0 %369 }
 0x223   : > { %v1068_v18 = vpop.eup %1067 }
 0x224   : > { %v292_v20 = vmul.f32 %v1068_v18, %v1066_v12 }
 0x226   : > { %1013 = vmatmul.mubr.msk.f32.vlgmr.msra.gmra.mrb[0].mxu1 %vm203_vm1, %v292_v20 }
 0x227   : > { %1016 = vmatpush3.xpose.msk.msra.mxu1 %vm203_vm1, %v372_v15  ;;  %1017 = vmatprep.mubr.msk.f32.mxu1 %vm1090_vm0, %v1089_v0 }
 0x228   : > { %1025 = vmatprep.subr.mxu1 %v1089_v0 }
 0x22a   : > { %1018 = vmatmul.mubr.msk.f32.vlgmr.msra.gmra.mrb[2].mxu1 %vm203_vm1, %v370_v21 }
 0x22b   : > { %1026 = vmatpush3.xpose.msk.msra.mxu1 %vm203_vm1, %v539_v17  ;;  %1027 = vmatprep.mubr.msk.f32.mxu1 %vm1090_vm0, %v1089_v0 }
 0x22c   : > { %1035 = vmatprep.subr.mxu1 %v1089_v0 }
 0x22e   : > { %1028 = vmatmul.mubr.msk.f32.vlgmr.msra.gmra.mrb[4].mxu1 %vm203_vm1, %v537_v19 }
 0x22f   : > { %1036 = vmatpush3.xpose.msk.msra.mxu1 %vm203_vm1, %v706_v22  ;;  %1037 = vmatprep.mubr.msk.f32.mxu1 %vm1090_vm0, %v1089_v0 }
 0x232   : > { %1038 = vmatmul.mubr.msk.f32.vlgmr.msra.gmra.mrb[6].mxu1 %vm203_vm1, %v704_v23 }
 0x2f9   : > { %v1182_v24 = vpop.f32.mrb[0].mxu1 }
 0x2fa   : > { %v1014_v25 = vpop.f32.mrb[1].mxu1 }
 0x2fd   : > { %v443_v26 = vpop.f32.mrb[2].mxu1 }
 0x2fe   : > { %v447_v27 = vmul.f32 0.35355338, %v443_v26  ;;  %v1019_v28 = vpop.f32.mrb[3].mxu1 }
 0x300   : > { %v448_v29 = vadd.f32 %v447_v27, %v1157_v4 }
 0x301   : > { %v610_v30 = vpop.f32.mrb[4].mxu1 }
 0x302   : > { %v614_v31 = vmul.f32 0.35355338, %v610_v30  ;;  %v1029_v32 = vpop.f32.mrb[5].mxu1  ;;  %v449_v33 = vsel %vm203_vm1, %v448_v29, -inf }
 0x303   : > { %450 = vmax.xlane.f32.xlu1 %v449_v33 }
 0x304   : > { %v615_v34 = vadd.f32 %v614_v31, %v1157_v4 }
 0x305   : > { %v777_v35 = vpop.f32.mrb[6].mxu1 }
 0x306   : > { %v781_v36 = vmul.f32 0.35355338, %v777_v35  ;;  %v1039_v37 = vpop.f32.mrb[7].mxu1  ;;  %v616_v38 = vsel %vm203_vm1, %v615_v34, -inf }
 0x307   : > { %617 = vmax.xlane.f32.xlu0 %v616_v38 }
 0x308   : > { %v782_v39 = vadd.f32 %v781_v36, %v1157_v4 }
 0x30a   : > { %v783_v40 = vsel %vm203_vm1, %v782_v39, -inf }
 0x30b   : > { %784 = vmax.xlane.f32.xlu1 %v783_v40 }
 0x31c   : > { %460 = vrot.lane.b32.xlu1 %v1145_v1, %s1095_s28 }
 0x390   : > { %v451_v41 = vpop.xlane.xlu1 %450 }
 0x391   : > { %v452_v42 = vsub.f32 %v448_v29, %v451_v41 }
 0x393   : > { %v453_v43 = vmul.f32 1.442695, %v452_v42 }
 0x394   : > { %v618_v44 = vpop.xlane.xlu0 %617 }
 0x395   : > { %1069 = vpow2.f32 %v453_v43  ;;  %v619_v45 = vsub.f32 %v615_v34, %v618_v44 }
 0x397   : > { %v620_v46 = vmul.f32 1.442695, %v619_v45 }
 0x398   : > { %v785_v47 = vpop.xlane.xlu1 %784 }
 0x399   : > { %1071 = vpow2.f32 %v620_v46  ;;  %v786_v48 = vsub.f32 %v782_v39, %v785_v47 }
 0x39b   : > { %v787_v49 = vmul.f32 1.442695, %v786_v48 }
 0x39c   : > { %v461_v50 = vpop.permute.xlu1 %460 }
 0x39d   : > { %1073 = vpow2.f32 %v787_v49  ;;  %1021 = vmatpush3.msra.mxu0 %v461_v50 }
 0x39e   : > { %1030 = vmatprep.subr.mxu0 %v1089_v0 }
 0x39f   : > { %v1070_v51 = vpop.eup %1069 }
 0x3a0   : > { %v455_v52 = vsel %vm203_vm1, %v1070_v51, 0.0 }
 0x3a1   : > { %456 = vadd.xlane.f32.xlu0 %v455_v52 }
 0x3a3   : > { %v1072_v53 = vpop.eup %1071 }
 0x3a4   : > { %v622_v54 = vsel %vm203_vm1, %v1072_v53, 0.0 }
 0x3a5   : > { %623 = vadd.xlane.f32.xlu1 %v622_v54 }
 0x3a7   : > { %v1074_v55 = vpop.eup %1073 }
 0x3a8   : > { %v789_v56 = vsel %vm203_vm1, %v1074_v55, 0.0 }
 0x3a9   : > { %790 = vadd.xlane.f32.xlu0 %v789_v56 }
 0x3b6   : > { %794 = vrot.lane.b32.xlu1 %v1145_v1, %s1096_s29 }
 0x3bf   : > { %627 = vrot.lane.b32.xlu0 %v1145_v1, %s1097_s30 }
 0x42e   : > { %v457_v57 = vpop.xlane.xlu0 %456 }
 0x42f   : > { %1075 = vrcp.f32 %v457_v57 }
 0x432   : > { %v624_v58 = vpop.xlane.xlu1 %623 }
 0x433   : > { %1077 = vrcp.f32 %v624_v58 }
 0x436   : > { %v791_v59 = vpop.xlane.xlu0 %790  ;;  %v795_v1 = vpop.permute.xlu1 %794 }
 0x437   : > { %1079 = vrcp.f32 %v791_v59 }
 0x439   : > { %v1076_v60 = vpop.eup %1075 }
 0x43a   : > { %v459_v61 = vmul.f32 %v1076_v60, %v1070_v51  ;;  %v628_v62 = vpop.permute.xlu0 %627 }
 0x43c   : > { %1023 = vmatmul.mubr.msk.f32.vlgmr.msra.gmra.mrb[2].mxu0 %vm203_vm1, %v459_v61 }
 0x43d   : > { %v1078_v63 = vpop.eup %1077  ;;  %1031 = vmatpush3.msra.mxu0 %v628_v62  ;;  %1032 = vmatprep.mubr.msk.f32.mxu0 %vm1090_vm0, %v1089_v0 }
 0x43e   : > { %v626_v2 = vmul.f32 %v1078_v63, %v1072_v53  ;;  %1040 = vmatprep.subr.mxu0 %v1089_v0 }
 0x440   : > { %1033 = vmatmul.mubr.msk.f32.vlgmr.msra.gmra.mrb[4].mxu0 %vm203_vm1, %v626_v2 }
 0x441   : > { %v1080_v3 = vpop.eup %1079  ;;  %1041 = vmatpush3.msra.mxu0 %v795_v1  ;;  %1042 = vmatprep.mubr.msk.f32.mxu0 %vm1090_vm0, %v1089_v0 }
 0x442   : > { %v793_v4 = vmul.f32 %v1080_v3, %v1074_v55 }
 0x444   : > { %1043 = vmatmul.mubr.msk.f32.vlgmr.msra.gmra.mrb[6].mxu0 %vm203_vm1, %v793_v4 }
 0x50f   : > { %v532_v5 = vpop.f32.mrb[2].mxu0 }
 0x510   : > { %871 = vrot.lane.b32.xlu1 %v532_v5, %s1098_s4  ;;  %v1024_v6 = vpop.f32.mrb[3].mxu0 }
 0x513   : > { %v699_v7 = vpop.f32.mrb[4].mxu0 }
 0x514   : > { %875 = vrot.lane.b32.xlu0 %v699_v7, %s1099_s5  ;;  %v1034_v8 = vpop.f32.mrb[5].mxu0 }
 0x517   : > { %v866_v9 = vpop.f32.mrb[6].mxu0 }
 0x518   : > { %879 = vrot.lane.b32.xlu1 %v866_v9, %s1100_s6  ;;  %v1044_v10 = vpop.f32.mrb[7].mxu0 }
 0x582   : > { %v872_v11 = vpop.permute.xlu1 %871 }
 0x583   : > { %v882_v0 = vsel %vm203_vm1, %v1182_v24, %v872_v11 }
 0x586   : > { %v876_v12 = vpop.permute.xlu0 %875 }
 0x587   : > { %v884_v13 = vsel %vm883_vm2, %v882_v0, %v876_v12 }
 0x58a   : > { %v880_v14 = vpop.permute.xlu1 %879 }
 0x58b   : > { %v886_v15 = vsel %vm885_vm3, %v884_v13, %v880_v14 }
 0x58c   : > { %888 = vst.msk [vmem:[%s199_s9] sm:$0xff] %vm887_vm4, %v886_v15 }
 0x58d PF: > { %s13_s12 = sadd.s32 1, %s1087_s12  }
 0x58e   : > { %p10_p4 = scmp.ge.s32.totalorder %s13_s12, 4  }
 0x590   :  { %12 = sbr.rel (!%p10_p4) target bundleno = 1 (0x1), region = 68 }

// kernel: transformer_forward.77
= control target key start
LH: loop header
LB: loop body
LE: loop exit
PB: predicated region body
PF: predicated region fallthrough
CT: control target
= control target key end

     0   :  { %vm30_vm0 = vcmask 261120   ;;  %vm19_vm1 = vcmask 523264   ;;  %v205_v6 = vmov 0.0   ;;  %s270_s0 = inlined_call_operand.vmem [shape: f32[16,32], index: 0, kind: input, shape index: {}]   ;;  %s271_s1 = inlined_call_operand.vmem [shape: f32[32,64], index: 1, kind: input, shape index: {}]   ;;  %s272_s2 = inlined_call_operand.vmem [shape: f32[1,64], index: 2, kind: input, shape index: {}]   ;;  %s273_s3 = inlined_call_operand.hbm [shape: f32[16,64], index: 3, kind: output, shape index: {}]  }
   0x1   :  { %v26_v0 = vld [vmem:[%s271_s1] sm:$0xff]  ;;  %v27_v1 = vld [vmem:[%s271_s1 + $0x8] sm:$0xff]  ;;  %v28_v2 = vld [vmem:[%s271_s1 + $0x10] sm:$0xff]  ;;  %21 = vst.msk [vmem:[#allocation2 + $0x8] sm:$0xff] %vm19_vm1, %v205_v6 }
   0x2   :  { %v169_v3 = vpack.c.bf16 %v27_v1, %v26_v0  ;;  %v29_v4 = vld [vmem:[%s271_s1 + $0x18] sm:$0xff]  ;;  %v24_v5 = vld [vmem:[%s270_s0] sm:$0xff]  ;;  %20 = vst.msk [vmem:[#allocation2] sm:$0xff] %vm19_vm1, %v205_v6 }
   0x3   :  { %v173_v7 = vpack.c.bf16 %v29_v4, %v28_v2  ;;  %166 = vmatprep.mubr.msk.f32.mxu0 %vm30_vm0, %v24_v5 }
   0x4   :  { %8 = vsyncpa [#allocation4], 0  ;;  %170 = vmatprep.subr.bf16.mxu0 %v169_v3  ;;  %v25_v8 = vld [vmem:[%s270_s0 + $0x8] sm:$0xff]  ;;  %v151_v15 = vld [vmem:[%s272_s2] ss:$0 sm:$0xff]  ;;  %s206_s25 = smov [#allocation3]  }
   0x5   :  { %172 = vmatpush3.bf16.msra.mxu0 %v169_v3  ;;  %s138_s26 = sshll.u32 %s206_s25, 4  ;;  %s139_s26 = int_to_ptr.vmem [resolvable:$true] %s138_s26 }
   0x6   :  { %174 = vmatprep.subr.bf16.mxu0 %v173_v7  ;;  %s181_s0 = scalar_lea.vmem %s139_s26, 256  ;;  %p186_p1 = scmp.lt.s32.totalorder %s139_s26, %s139_s26 }
   0x7   :  { %p182_p0 = scmp.ne.s32.totalorder %s139_s26, %s181_s0  ;;  %p187_p2 = scmp.lt.s32.totalorder %s181_s0, %s181_s0 }
   0x8   :  { %v23_v9 = vld [vmem:[#allocation2 + $0x8] sm:$0xff] }
   0x9   :  { %176 = vmatpush3.bf16.msra.mxu0 %v173_v7  ;;  %v22_v10 = vld [vmem:[#allocation2] sm:$0xff]  ;;  %p188_p3 = por %p187_p2, %p186_p1 }
   0xb   :  { %p189_p4 = pnand %p188_p3, %p182_p0 }
   0xc   :  { %167 = vmatmul.mubr.msk.f32.vlgmr.msra.gmra.mrb[0].mxu0 %vm30_vm0, %v25_v8 }
  0xdf   :  { %v168_v11 = vpop.f32.mrb[0].mxu0 }
  0xe0   :  { %v113_v12 = vadd.f32 %v168_v11, %v23_v9  ;;  %v103_v13 = vpop.f32.mrb[1].mxu0 }
  0xe1   :  { %v112_v14 = vadd.f32 %v103_v13, %v22_v10 }
  0xe2   :  { %116 = vst.msk [vmem:[#allocation2 + $0x8] sm:$0xff] %vm19_vm1, %v113_v12 }
  0xe3   :  { %115 = vst.msk [vmem:[#allocation2] sm:$0xff] %vm19_vm1, %v112_v14 }
  0xe9   :  { %v121_v16 = vld [vmem:[#allocation2 + $0x8] sm:$0xff] }
  0xea   :  { %v120_v17 = vld [vmem:[#allocation2] sm:$0xff]  ;;  %v130_v18 = vadd.f32 %v151_v15, %v121_v16 }
  0xeb   :  { %v129_v19 = vadd.f32 %v151_v15, %v120_v17 }
  0xec   :  { %132 = vst.msk [vmem:[#allocation3 + $0x8] sm:$0xff] %vm19_vm1, %v130_v18 }
  0xed   :  { %131 = vst.msk [vmem:[#allocation3] sm:$0xff] %vm19_vm1, %v129_v19 }
  0xee   :  { %192 = shalt.err (!%p189_p4)
}
  0xef   :  { %s193_s28 = scalar_lea.hbm %s273_s3, 256 }
  0xf0   :  { %p194_p5 = scmp.ne.s32.totalorder %s273_s3, %s193_s28  ;;  %p197_p6 = scmp.lt.u32.totalorder %s193_s28, %s273_s3 }
  0xf2   :  { %p199_p7 = pnand %p197_p6, %p194_p5 }
  0xf4   :  { %202 = shalt.err (!%p199_p7)
}
  0xf5   :  { %s207_s6 = smov 128   ;;  %s208_s7 = smov 8  }
  0xf6   :  { %144 = dma.vmem_to_hbm [thread:$0]  %s139_s26, 256, %s273_s3, [#allocation4], %s207_s6, %s207_s6, %s208_s7  }
  0xf7   :  { %203 = dma.done.wait [#allocation4], 256  }
  0xf8   :  { %204 = vsyncadd [#allocation4], 4294967040 }
  0xf9   :  { %148 = vsyncpa [#allocation4], 1 }

</bundles_post_ra>
